<compile_context>
chip_gen: v7x
topology: tpu7x:2x2x1
jax: 0.10.0
libtpu: 0.0.40
codegen_flags: <defaults>
</compile_context>

<pallas_src>
import functools

import jax
import jax.numpy as jnp
from jax.experimental import pallas as pl
from jax.experimental.pallas import tpu as pltpu

LEAKY_SLOPE = 0.2
BN_EPS = 1e-5


def _leaky(v):
    return jnp.where(v >= 0, v, LEAKY_SLOPE * v)


# ---------------------------------------------------------------------------
# Kernel 1: conv1, conv2, neighbor-max, conv3, global point max -> (B, 1024)
# Grid: (batch, point-tile).
# ---------------------------------------------------------------------------
def conv_stage_kernel(
    x_ref,                      # (6, TN*K) f32, lane index = n*K + k (n local)
    w1_ref, s1_ref, t1_ref,     # conv1: (8, 64) bf16 (2 zero rows) + bn1 fold
    w2_ref, s2_ref, t2_ref,     # conv2: (64, 128) bf16 + bn2 fold
    w3_ref, s3_ref, t3_ref,     # conv3: (128, 1024) bf16 + bn3(1024) fold
    feat_ref,                   # (1, 1024) f32 - revisited accumulator
    h2_ref,                     # VMEM scratch (TN*K, 128) f32
    *, tn, k_neighbors,
):
    j = pl.program_id(1)
    L = tn * k_neighbors

    # Per-point channels-last layout: pad 6 -> 8 channels, transpose in VMEM
    # (only the 6-channel slab is relayouted, never the wide activations).
    x = x_ref[...]                                                 # (6, L)
    x = jnp.concatenate([x, jnp.zeros((2, L), x.dtype)], axis=0)   # (8, L)
    xt = x.T.astype(jnp.bfloat16)                                  # (L, 8)

    # conv1 (1x1 conv == per-point matmul) + folded BN + LeakyReLU  -> (L, 64)
    h = jnp.dot(xt, w1_ref[...], preferred_element_type=jnp.float32)
    h = _leaky(h * s1_ref[...] + t1_ref[...])

    # conv2 + BN + LeakyReLU -> (L, 128), written to scratch for strided reads
    h = jnp.dot(h.astype(jnp.bfloat16), w2_ref[...],
                preferred_element_type=jnp.float32)
    h2_ref[...] = _leaky(h * s2_ref[...] + t2_ref[...])

    # neighbor max over K: row n*K + kk for kk in [0, K) -> strided sublane
    # reads, combined with a log-depth maximum tree.
    slabs = [h2_ref[pl.ds(kk, tn, stride=k_neighbors), :]
             for kk in range(k_neighbors)]                         # K x (TN,128)
    while len(slabs) > 1:
        nxt = [jnp.maximum(slabs[i], slabs[i + 1])
               for i in range(0, len(slabs) - 1, 2)]
        if len(slabs) % 2:
            nxt.append(slabs[-1])
        slabs = nxt
    pooled = slabs[0]                                              # (TN, 128)

    # conv3 (1d 1x1 conv) + BN + LeakyReLU -> (TN, 1024)
    h3 = jnp.dot(pooled.astype(jnp.bfloat16), w3_ref[...],
                 preferred_element_type=jnp.float32)
    h3 = _leaky(h3 * s3_ref[...] + t3_ref[...])

    # global max over this tile's points, accumulated across point tiles
    gt = jnp.max(h3, axis=0, keepdims=True)                        # (1, 1024)

    @pl.when(j == 0)
    def _():
        feat_ref[...] = gt

    @pl.when(j > 0)
    def _():
        feat_ref[...] = jnp.maximum(feat_ref[...], gt)


# ---------------------------------------------------------------------------
# Kernel 2: batched MLP head (linear1 + bn + leaky, linear2 + bn + leaky,
# transform).  One grid step over the whole batch -> real (B, .) matmuls.
# ---------------------------------------------------------------------------
def head_kernel(
    f_ref,                       # (B, 1024) f32
    wl1_ref, s4_ref, t4_ref,     # 1024 -> 512  (+ the re-assigned bn3 fold)
    wl2_ref, s5_ref, t5_ref,     # 512 -> 256   (+ bn4 fold)
    wt_ref, bt_ref,              # transform: (256, 128)/(1, 128), lanes 9.. = 0
    out_ref,                     # (B, 128) f32, first 9 lanes = 3x3 transform
    g2_ref,                      # (B, 256) f32 (exposed for testing)
):
    g = jnp.dot(f_ref[...].astype(jnp.bfloat16), wl1_ref[...],
                preferred_element_type=jnp.float32)
    g = _leaky(g * s4_ref[...] + t4_ref[...])
    g = jnp.dot(g.astype(jnp.bfloat16), wl2_ref[...],
                preferred_element_type=jnp.float32)
    g = _leaky(g * s5_ref[...] + t5_ref[...])
    g2_ref[...] = g
    out_ref[...] = (jnp.dot(g.astype(jnp.bfloat16), wt_ref[...],
                            preferred_element_type=jnp.float32) + bt_ref[...])


def _pick_point_tile(n_points, k_neighbors):
    # Largest point tile whose lane extent (tile * K) keeps the input DMA
    # blocks 128-lane aligned; otherwise fall back to the whole point axis.
    for tn in (256, 128, 64, 32, 16, 8):
        if (tn < n_points and n_points % tn == 0
                and (tn * k_neighbors) % 128 == 0):
            return tn
    return n_points


def run_transform_net(x_nchw, params):
    """x_nchw: (B, 6, N, K) as in PyTorch. Returns ((B, 3, 3), (B, 256))."""
    B, c_in, N, K = x_nchw.shape
    assert c_in == 6
    # free (metadata-only) reshape - no HBM transpose pass
    x = x_nchw.astype(jnp.float32).reshape(B, c_in, N * K)

    tn = _pick_point_tile(N, K)
    grid = (B, N // tn)

    # conv1 weight padded to 8 input channels (zero rows) so the in-kernel
    # channel transpose operates on an (8, L) slab.
    w1p = jnp.concatenate(
        [params["w1"], jnp.zeros((2, 64), params["w1"].dtype)], axis=0)

    conv_params = [
        w1p, params["s1"], params["t1"],
        params["w2"], params["s2"], params["t2"],
        params["w3"], params["s3"], params["t3"],
    ]
    conv_in_specs = [pl.BlockSpec((None, c_in, tn * K), lambda b, j: (b, 0, j))]
    conv_in_specs += [pl.BlockSpec(p.shape, lambda b, j: (0, 0))
                      for p in conv_params]

    feat = pl.pallas_call(
        functools.partial(conv_stage_kernel, tn=tn, k_neighbors=K),
        out_shape=jax.ShapeDtypeStruct((B, 1, 1024), jnp.float32),
        grid=grid,
        in_specs=conv_in_specs,
        out_specs=pl.BlockSpec((None, 1, 1024), lambda b, j: (b, 0, 0)),
        scratch_shapes=[pltpu.VMEM((tn * K, 128), jnp.float32)],
        compiler_params=pltpu.CompilerParams(
            dimension_semantics=("parallel", "arbitrary")),
    )(x, *conv_params)
    feat = feat.reshape(B, 1024)

    # transform head weights, lane-padded 9 -> 128 so the final store is dense
    wt_pad = jnp.zeros((256, 128), params["wt"].dtype).at[:, :9].set(params["wt"])
    bt_pad = jnp.zeros((1, 128), jnp.float32).at[:, :9].set(params["bt"])
    head_params = [
        params["wl1"], params["s4"], params["t4"],
        params["wl2"], params["s5"], params["t5"],
        wt_pad, bt_pad,
    ]
    head_in_specs = [pl.BlockSpec((B, 1024), lambda i: (0, 0))]
    head_in_specs += [pl.BlockSpec(p.shape, lambda i: (0, 0))
                      for p in head_params]

    out_pad, g2 = pl.pallas_call(
        head_kernel,
        out_shape=(jax.ShapeDtypeStruct((B, 128), jnp.float32),
                   jax.ShapeDtypeStruct((B, 256), jnp.float32)),
        grid=(1,),
        in_specs=head_in_specs,
        out_specs=(pl.BlockSpec((B, 128), lambda i: (0, 0)),
                   pl.BlockSpec((B, 256), lambda i: (0, 0))),
        compiler_params=pltpu.CompilerParams(
            dimension_semantics=("arbitrary",)),
    )(feat, *head_params)

    return out_pad[:, :9].reshape(B, 3, 3), g2


def make_params(key):
    ks = jax.random.split(key, 11)

    def w(k, shape, scale=0.1):
        return (scale * jax.random.normal(k, shape, jnp.float32)
                ).astype(jnp.bfloat16)

    def bn_fold(k, c):
        # eval-mode BN folded to scale/shift (random stats to exercise the path)
        k1, k2, k3, k4 = jax.random.split(k, 4)
        gamma = 1.0 + 0.2 * jax.random.normal(k1, (c,), jnp.float32)
        beta = 0.1 * jax.random.normal(k2, (c,), jnp.float32)
        mean = 0.1 * jax.random.normal(k3, (c,), jnp.float32)
        var = jax.random.uniform(k4, (c,), jnp.float32, minval=0.5, maxval=1.5)
        s = gamma / jnp.sqrt(var + BN_EPS)
        t = beta - mean * s
        return s.reshape(1, c), t.reshape(1, c)

    s1, t1 = bn_fold(ks[5], 64)
    s2, t2 = bn_fold(ks[6], 128)
    s3, t3 = bn_fold(ks[7], 1024)   # bn captured inside conv3's Sequential
    s4, t4 = bn_fold(ks[8], 512)    # the re-assigned self.bn3
    s5, t5 = bn_fold(ks[9], 256)    # self.bn4

    return dict(
        w1=w(ks[0], (6, 64)),
        w2=w(ks[1], (64, 128)),
        w3=w(ks[2], (128, 1024)),
        wl1=w(ks[3], (1024, 512)),
        wl2=w(ks[4], (512, 256)),
        # PyTorch __init__ sets transform.weight = 0, bias = eye(3) (identity
        # output); a small random weight is used here purely so the final
        # matmul path is actually exercised by the numeric test.
        wt=w(ks[10], (256, 9), scale=0.02),
        bt=jnp.eye(3, dtype=jnp.float32).reshape(1, 9),
        s1=s1, t1=t1, s2=s2, t2=t2, s3=s3, t3=t3, s4=s4, t4=t4, s5=s5, t5=t5,
    )


def reference(x_nchw, p):
    """Pure-JAX replica of the PyTorch forward (eval-mode BN, same bf16 casts)."""
    B, C, N, K = x_nchw.shape
    x = jnp.transpose(x_nchw.astype(jnp.float32), (0, 2, 3, 1))   # (B, N, K, 6)
    x = x.reshape(B, N * K, C).astype(jnp.bfloat16)

    h = jnp.einsum("bpc,cd->bpd", x, p["w1"],
                   preferred_element_type=jnp.float32)
    h = _leaky(h * p["s1"] + p["t1"])
    h = jnp.einsum("bpc,cd->bpd", h.astype(jnp.bfloat16), p["w2"],
                   preferred_element_type=jnp.float32)
    h = _leaky(h * p["s2"] + p["t2"])
    h = h.reshape(B, N, K, 128).max(axis=2)                        # max over K
    h = jnp.einsum("bnc,cd->bnd", h.astype(jnp.bfloat16), p["w3"],
                   preferred_element_type=jnp.float32)
    h = _leaky(h * p["s3"] + p["t3"])
    g = h.max(axis=1)                                              # (B, 1024)

    g = jnp.dot(g.astype(jnp.bfloat16), p["wl1"],
                preferred_element_type=jnp.float32)
    g = _leaky(g * p["s4"] + p["t4"])
    g = jnp.dot(g.astype(jnp.bfloat16), p["wl2"],
                preferred_element_type=jnp.float32)
    g2 = _leaky(g * p["s5"] + p["t5"])
    out = jnp.dot(g2.astype(jnp.bfloat16), p["wt"],
                  preferred_element_type=jnp.float32) + p["bt"]
    return out.reshape(B, 3, 3), g2


if __name__ == "__main__":
    key = jax.random.PRNGKey(0)
    kx, kp = jax.random.split(key)
    B, N, K = 2, 16, 8
    x = jax.random.normal(kx, (B, 6, N, K), jnp.float32)   # PyTorch NCHW input
    params = make_params(kp)

    out, g2 = run_transform_net(x, params)
    out = jax.block_until_ready(out)
    g2 = jax.block_until_ready(g2)

    ref_out, ref_g2 = reference(x, params)
    assert out.shape == (B, 3, 3)
    assert jnp.allclose(out, ref_out, rtol=1e-2, atol=1e-2), (
        float(jnp.max(jnp.abs(out - ref_out))))
    assert jnp.allclose(g2, ref_g2, rtol=1e-2, atol=1e-2), (
        float(jnp.max(jnp.abs(g2 - ref_g2))))

    print("KERNEL_OK")
</pallas_src>

<mosaic_0001>
module attributes {stable_mosaic.version = 11 : i64} {
  func.func @conv_stage_kernel(%arg0: i32, %arg1: i32, %arg2: memref<1x6x128xf32, #tpu.memory_space<vmem>>, %arg3: memref<8x64xbf16, #tpu.memory_space<vmem>>, %arg4: memref<1x64xf32, #tpu.memory_space<vmem>>, %arg5: memref<1x64xf32, #tpu.memory_space<vmem>>, %arg6: memref<64x128xbf16, #tpu.memory_space<vmem>>, %arg7: memref<1x128xf32, #tpu.memory_space<vmem>>, %arg8: memref<1x128xf32, #tpu.memory_space<vmem>>, %arg9: memref<128x1024xbf16, #tpu.memory_space<vmem>>, %arg10: memref<1x1024xf32, #tpu.memory_space<vmem>>, %arg11: memref<1x1024xf32, #tpu.memory_space<vmem>>, %arg12: memref<1x1x1024xf32, #tpu.memory_space<vmem>>, %arg13: memref<128x128xf32, #tpu.memory_space<vmem>>) attributes {dimension_semantics = [#tpu.dimension_semantics<parallel>, #tpu.dimension_semantics<arbitrary>], iteration_bounds = array<i64: 2, 1>, scalar_prefetch = 0 : i64, scratch_operands = 1 : i64, tpu.core_type = #tpu.core_type<tc>, window_params = [{transform_indices = @transform_0, window_bounds = array<i64: 1, 6, 128>}, {pipeline_mode = #tpu.pipeline_mode<synchronous>, transform_indices = @transform_1, window_bounds = array<i64: 8, 64>}, {pipeline_mode = #tpu.pipeline_mode<synchronous>, transform_indices = @transform_2, window_bounds = array<i64: 1, 64>}, {pipeline_mode = #tpu.pipeline_mode<synchronous>, transform_indices = @transform_3, window_bounds = array<i64: 1, 64>}, {pipeline_mode = #tpu.pipeline_mode<synchronous>, transform_indices = @transform_4, window_bounds = array<i64: 64, 128>}, {pipeline_mode = #tpu.pipeline_mode<synchronous>, transform_indices = @transform_5, window_bounds = array<i64: 1, 128>}, {pipeline_mode = #tpu.pipeline_mode<synchronous>, transform_indices = @transform_6, window_bounds = array<i64: 1, 128>}, {pipeline_mode = #tpu.pipeline_mode<synchronous>, transform_indices = @transform_7, window_bounds = array<i64: 128, 1024>}, {pipeline_mode = #tpu.pipeline_mode<synchronous>, transform_indices = @transform_8, window_bounds = array<i64: 1, 1024>}, {pipeline_mode = #tpu.pipeline_mode<synchronous>, transform_indices = @transform_9, window_bounds = array<i64: 1, 1024>}, {transform_indices = @transform_10, window_bounds = array<i64: 1, 1, 1024>}]} {
    %c0 = arith.constant 0 : index
    %c0_0 = arith.constant 0 : index
    %c0_1 = arith.constant 0 : index
    %0 = vector.load %arg2[%c0, %c0_0, %c0_1] : memref<1x6x128xf32, #tpu.memory_space<vmem>>, vector<1x6x128xf32>
    %1 = vector.shape_cast %0 : vector<1x6x128xf32> to vector<6x128xf32>
    %cst = arith.constant 0.000000e+00 : f32
    %2 = vector.broadcast %cst : f32 to vector<2x128xf32>
    %3 = tpu.concatenate %1, %2 in 0 : vector<6x128xf32>, vector<2x128xf32> -> vector<8x128xf32>
    %4 = tpu.transpose %3, [1, 0] : vector<8x128xf32> -> vector<128x8xf32>
    %5 = arith.truncf %4 : vector<128x8xf32> to vector<128x8xbf16>
    %c0_2 = arith.constant 0 : index
    %c0_3 = arith.constant 0 : index
    %6 = vector.load %arg3[%c0_2, %c0_3] : memref<8x64xbf16, #tpu.memory_space<vmem>>, vector<8x64xbf16>
    %cst_4 = arith.constant dense<0.000000e+00> : vector<128x64xf32>
    %7 = tpu.matmul %5, %6, %cst_4 {dimension_numbers = #tpu.dot_dimension_numbers<[1], [0], [0], [1], [0, 0, 1, 1], [], []>} : vector<128x8xbf16>, vector<8x64xbf16>, vector<128x64xf32> -> vector<128x64xf32>
    %c0_5 = arith.constant 0 : index
    %c0_6 = arith.constant 0 : index
    %8 = vector.load %arg4[%c0_5, %c0_6] : memref<1x64xf32, #tpu.memory_space<vmem>>, vector<1x64xf32>
    %9 = vector.broadcast %8 : vector<1x64xf32> to vector<128x64xf32>
    %10 = arith.mulf %7, %9 : vector<128x64xf32>
    %c0_7 = arith.constant 0 : index
    %c0_8 = arith.constant 0 : index
    %11 = vector.load %arg5[%c0_7, %c0_8] : memref<1x64xf32, #tpu.memory_space<vmem>>, vector<1x64xf32>
    %12 = vector.broadcast %11 : vector<1x64xf32> to vector<128x64xf32>
    %13 = arith.addf %10, %12 : vector<128x64xf32>
    %cst_9 = arith.constant 0.000000e+00 : f32
    %14 = vector.broadcast %cst_9 : f32 to vector<128x64xf32>
    %15 = arith.cmpf oge, %13, %14 : vector<128x64xf32>
    %cst_10 = arith.constant 2.000000e-01 : f32
    %16 = vector.broadcast %cst_10 : f32 to vector<128x64xf32>
    %17 = arith.mulf %16, %13 : vector<128x64xf32>
    %18 = arith.select %15, %13, %17 : vector<128x64xi1>, vector<128x64xf32>
    %19 = arith.truncf %18 : vector<128x64xf32> to vector<128x64xbf16>
    %c0_11 = arith.constant 0 : index
    %c0_12 = arith.constant 0 : index
    %20 = vector.load %arg6[%c0_11, %c0_12] : memref<64x128xbf16, #tpu.memory_space<vmem>>, vector<64x128xbf16>
    %cst_13 = arith.constant dense<0.000000e+00> : vector<128x128xf32>
    %21 = tpu.matmul %19, %20, %cst_13 {dimension_numbers = #tpu.dot_dimension_numbers<[1], [0], [0], [1], [0, 0, 1, 1], [], []>} : vector<128x64xbf16>, vector<64x128xbf16>, vector<128x128xf32> -> vector<128x128xf32>
    %c0_14 = arith.constant 0 : index
    %c0_15 = arith.constant 0 : index
    %22 = vector.load %arg7[%c0_14, %c0_15] : memref<1x128xf32, #tpu.memory_space<vmem>>, vector<1x128xf32>
    %23 = vector.broadcast %22 : vector<1x128xf32> to vector<128x128xf32>
    %24 = arith.mulf %21, %23 : vector<128x128xf32>
    %c0_16 = arith.constant 0 : index
    %c0_17 = arith.constant 0 : index
    %25 = vector.load %arg8[%c0_16, %c0_17] : memref<1x128xf32, #tpu.memory_space<vmem>>, vector<1x128xf32>
    %26 = vector.broadcast %25 : vector<1x128xf32> to vector<128x128xf32>
    %27 = arith.addf %24, %26 : vector<128x128xf32>
    %cst_18 = arith.constant 0.000000e+00 : f32
    %28 = vector.broadcast %cst_18 : f32 to vector<128x128xf32>
    %29 = arith.cmpf oge, %27, %28 : vector<128x128xf32>
    %cst_19 = arith.constant 2.000000e-01 : f32
    %30 = vector.broadcast %cst_19 : f32 to vector<128x128xf32>
    %31 = arith.mulf %30, %27 : vector<128x128xf32>
    %32 = arith.select %29, %27, %31 : vector<128x128xi1>, vector<128x128xf32>
    %c0_20 = arith.constant 0 : index
    %c0_21 = arith.constant 0 : index
    %33 = vector.load %arg13[%c0_20, %c0_21] : memref<128x128xf32, #tpu.memory_space<vmem>>, vector<128x128xf32>
    tpu.vector_store %arg13[%c0_20, %c0_21], %32 {strides = array<i32>} : memref<128x128xf32, #tpu.memory_space<vmem>>, vector<128x128xf32>,
    %c0_22 = arith.constant 0 : index
    %c0_23 = arith.constant 0 : index
    %34 = tpu.strided_load %arg13[%c0_22, %c0_23] {strides = array<i32: 8, 1>} : memref<128x128xf32, #tpu.memory_space<vmem>>, vector<16x128xf32>
    %c1 = arith.constant 1 : index
    %c0_24 = arith.constant 0 : index
    %35 = tpu.strided_load %arg13[%c1, %c0_24] {strides = array<i32: 8, 1>} : memref<128x128xf32, #tpu.memory_space<vmem>>, vector<16x128xf32>
    %c2 = arith.constant 2 : index
    %c0_25 = arith.constant 0 : index
    %36 = tpu.strided_load %arg13[%c2, %c0_25] {strides = array<i32: 8, 1>} : memref<128x128xf32, #tpu.memory_space<vmem>>, vector<16x128xf32>
    %c3 = arith.constant 3 : index
    %c0_26 = arith.constant 0 : index
    %37 = tpu.strided_load %arg13[%c3, %c0_26] {strides = array<i32: 8, 1>} : memref<128x128xf32, #tpu.memory_space<vmem>>, vector<16x128xf32>
    %c4 = arith.constant 4 : index
    %c0_27 = arith.constant 0 : index
    %38 = tpu.strided_load %arg13[%c4, %c0_27] {strides = array<i32: 8, 1>} : memref<128x128xf32, #tpu.memory_space<vmem>>, vector<16x128xf32>
    %c5 = arith.constant 5 : index
    %c0_28 = arith.constant 0 : index
    %39 = tpu.strided_load %arg13[%c5, %c0_28] {strides = array<i32: 8, 1>} : memref<128x128xf32, #tpu.memory_space<vmem>>, vector<16x128xf32>
    %c6 = arith.constant 6 : index
    %c0_29 = arith.constant 0 : index
    %40 = tpu.strided_load %arg13[%c6, %c0_29] {strides = array<i32: 8, 1>} : memref<128x128xf32, #tpu.memory_space<vmem>>, vector<16x128xf32>
    %c7 = arith.constant 7 : index
    %c0_30 = arith.constant 0 : index
    %41 = tpu.strided_load %arg13[%c7, %c0_30] {strides = array<i32: 8, 1>} : memref<128x128xf32, #tpu.memory_space<vmem>>, vector<16x128xf32>
    %42 = arith.maximumf %34, %35 : vector<16x128xf32>
    %43 = arith.maximumf %36, %37 : vector<16x128xf32>
    %44 = arith.maximumf %38, %39 : vector<16x128xf32>
    %45 = arith.maximumf %40, %41 : vector<16x128xf32>
    %46 = arith.maximumf %42, %43 : vector<16x128xf32>
    %47 = arith.maximumf %44, %45 : vector<16x128xf32>
    %48 = arith.maximumf %46, %47 : vector<16x128xf32>
    %49 = arith.truncf %48 : vector<16x128xf32> to vector<16x128xbf16>
    %c0_31 = arith.constant 0 : index
    %c0_32 = arith.constant 0 : index
    %50 = vector.load %arg9[%c0_31, %c0_32] : memref<128x1024xbf16, #tpu.memory_space<vmem>>, vector<128x1024xbf16>
    %cst_33 = arith.constant dense<0.000000e+00> : vector<16x1024xf32>
    %51 = tpu.matmul %49, %50, %cst_33 {dimension_numbers = #tpu.dot_dimension_numbers<[1], [0], [0], [1], [0, 0, 1, 1], [], []>} : vector<16x128xbf16>, vector<128x1024xbf16>, vector<16x1024xf32> -> vector<16x1024xf32>
    %c0_34 = arith.constant 0 : index
    %c0_35 = arith.constant 0 : index
    %52 = vector.load %arg10[%c0_34, %c0_35] : memref<1x1024xf32, #tpu.memory_space<vmem>>, vector<1x1024xf32>
    %53 = vector.broadcast %52 : vector<1x1024xf32> to vector<16x1024xf32>
    %54 = arith.mulf %51, %53 : vector<16x1024xf32>
    %c0_36 = arith.constant 0 : index
    %c0_37 = arith.constant 0 : index
    %55 = vector.load %arg11[%c0_36, %c0_37] : memref<1x1024xf32, #tpu.memory_space<vmem>>, vector<1x1024xf32>
    %56 = vector.broadcast %55 : vector<1x1024xf32> to vector<16x1024xf32>
    %57 = arith.addf %54, %56 : vector<16x1024xf32>
    %cst_38 = arith.constant 0.000000e+00 : f32
    %58 = vector.broadcast %cst_38 : f32 to vector<16x1024xf32>
    %59 = arith.cmpf oge, %57, %58 : vector<16x1024xf32>
    %cst_39 = arith.constant 2.000000e-01 : f32
    %60 = vector.broadcast %cst_39 : f32 to vector<16x1024xf32>
    %61 = arith.mulf %60, %57 : vector<16x1024xf32>
    %62 = arith.select %59, %57, %61 : vector<16x1024xi1>, vector<16x1024xf32>
    %cst_40 = arith.constant dense<0xFF800000> : vector<1024xf32>
    %63 = vector.multi_reduction <maximumf>, %62, %cst_40 [0] : vector<16x1024xf32> to vector<1024xf32>
    %64 = vector.shape_cast %63 : vector<1024xf32> to vector<1x1024xf32>
    %c0_i32 = arith.constant 0 : i32
    %65 = arith.cmpi eq, %arg1, %c0_i32 : i32
    %66 = arith.extui %65 : i1 to i32
    %c0_i32_41 = arith.constant 0 : i32
    %67 = arith.cmpi ne, %66, %c0_i32_41 : i32
    scf.if %67 {
      %c0_44 = arith.constant 0 : index
      %c0_45 = arith.constant 0 : index
      %c0_46 = arith.constant 0 : index
      %71 = vector.load %arg12[%c0_44, %c0_45, %c0_46] : memref<1x1x1024xf32, #tpu.memory_space<vmem>>, vector<1x1x1024xf32>
      %72 = vector.shape_cast %71 : vector<1x1x1024xf32> to vector<1x1024xf32>
      %73 = vector.shape_cast %64 : vector<1x1024xf32> to vector<1x1x1024xf32>
      tpu.vector_store %arg12[%c0_44, %c0_45, %c0_46], %73 {strides = array<i32>} : memref<1x1x1024xf32, #tpu.memory_space<vmem>>, vector<1x1x1024xf32>,
    } else {
    }
    %c0_i32_42 = arith.constant 0 : i32
    %68 = arith.cmpi sgt, %arg1, %c0_i32_42 : i32
    %69 = arith.extui %68 : i1 to i32
    %c0_i32_43 = arith.constant 0 : i32
    %70 = arith.cmpi ne, %69, %c0_i32_43 : i32
    scf.if %70 {
      %c0_44 = arith.constant 0 : index
      %c0_45 = arith.constant 0 : index
      %c0_46 = arith.constant 0 : index
      %71 = vector.load %arg12[%c0_44, %c0_45, %c0_46] : memref<1x1x1024xf32, #tpu.memory_space<vmem>>, vector<1x1x1024xf32>
      %72 = vector.shape_cast %71 : vector<1x1x1024xf32> to vector<1x1024xf32>
      %73 = arith.maximumf %72, %64 : vector<1x1024xf32>
      %c0_47 = arith.constant 0 : index
      %c0_48 = arith.constant 0 : index
      %c0_49 = arith.constant 0 : index
      %74 = vector.load %arg12[%c0_47, %c0_48, %c0_49] : memref<1x1x1024xf32, #tpu.memory_space<vmem>>, vector<1x1x1024xf32>
      %75 = vector.shape_cast %74 : vector<1x1x1024xf32> to vector<1x1024xf32>
      %76 = vector.shape_cast %73 : vector<1x1024xf32> to vector<1x1x1024xf32>
      tpu.vector_store %arg12[%c0_47, %c0_48, %c0_49], %76 {strides = array<i32>} : memref<1x1x1024xf32, #tpu.memory_space<vmem>>, vector<1x1x1024xf32>,
    } else {
    }
    return
  }
  func.func @transform_0(%arg0: i32, %arg1: i32) -> (i32, i32, i32) {
    %c0_i32 = arith.constant 0 : i32
    %c0_i32_0 = arith.constant 0 : i32
    return %arg0, %c0_i32, %arg1 : i32, i32, i32
  }
  func.func @transform_1(%arg0: i32, %arg1: i32) -> (i32, i32) {
    %c0_i32 = arith.constant 0 : i32
    %c0_i32_0 = arith.constant 0 : i32
    %c0_i32_1 = arith.constant 0 : i32
    return %c0_i32, %c0_i32_0 : i32, i32
  }
  func.func @transform_2(%arg0: i32, %arg1: i32) -> (i32, i32) {
    %c0_i32 = arith.constant 0 : i32
    %c0_i32_0 = arith.constant 0 : i32
    %c0_i32_1 = arith.constant 0 : i32
    return %c0_i32, %c0_i32_0 : i32, i32
  }
  func.func @transform_3(%arg0: i32, %arg1: i32) -> (i32, i32) {
    %c0_i32 = arith.constant 0 : i32
    %c0_i32_0 = arith.constant 0 : i32
    %c0_i32_1 = arith.constant 0 : i32
    return %c0_i32, %c0_i32_0 : i32, i32
  }
  func.func @transform_4(%arg0: i32, %arg1: i32) -> (i32, i32) {
    %c0_i32 = arith.constant 0 : i32
    %c0_i32_0 = arith.constant 0 : i32
    %c0_i32_1 = arith.constant 0 : i32
    return %c0_i32, %c0_i32_0 : i32, i32
  }
  func.func @transform_5(%arg0: i32, %arg1: i32) -> (i32, i32) {
    %c0_i32 = arith.constant 0 : i32
    %c0_i32_0 = arith.constant 0 : i32
    %c0_i32_1 = arith.constant 0 : i32
    return %c0_i32, %c0_i32_0 : i32, i32
  }
  func.func @transform_6(%arg0: i32, %arg1: i32) -> (i32, i32) {
    %c0_i32 = arith.constant 0 : i32
    %c0_i32_0 = arith.constant 0 : i32
    %c0_i32_1 = arith.constant 0 : i32
    return %c0_i32, %c0_i32_0 : i32, i32
  }
  func.func @transform_7(%arg0: i32, %arg1: i32) -> (i32, i32) {
    %c0_i32 = arith.constant 0 : i32
    %c0_i32_0 = arith.constant 0 : i32
    %c0_i32_1 = arith.constant 0 : i32
    return %c0_i32, %c0_i32_0 : i32, i32
  }
  func.func @transform_8(%arg0: i32, %arg1: i32) -> (i32, i32) {
    %c0_i32 = arith.constant 0 : i32
    %c0_i32_0 = arith.constant 0 : i32
    %c0_i32_1 = arith.constant 0 : i32
    return %c0_i32, %c0_i32_0 : i32, i32
  }
  func.func @transform_9(%arg0: i32, %arg1: i32) -> (i32, i32) {
    %c0_i32 = arith.constant 0 : i32
    %c0_i32_0 = arith.constant 0 : i32
    %c0_i32_1 = arith.constant 0 : i32
    return %c0_i32, %c0_i32_0 : i32, i32
  }
  func.func @transform_10(%arg0: i32, %arg1: i32) -> (i32, i32, i32) {
    %c0_i32 = arith.constant 0 : i32
    %c0_i32_0 = arith.constant 0 : i32
    %c0_i32_1 = arith.constant 0 : i32
    return %arg0, %c0_i32, %c0_i32_0 : i32, i32, i32
  }
}

</mosaic_0001>

<bundles_post_ra>
// kernel: tpu_custom_call.1
= control target key start
LH: loop header
LB: loop body
LE: loop exit
PB: predicated region body
PF: predicated region fallthrough
CT: control target
= control target key end

     0   :  { %s3045_s0 = inlined_call_operand.vmem [shape: f32[2,6,128], index: 0, kind: input, shape index: {}]   ;;  %s3046_s1 = inlined_call_operand.hbm [shape: bf16[8,64], index: 1, kind: input, shape index: {}]   ;;  %s3047_s2 = inlined_call_operand.vmem [shape: f32[1,64], index: 2, kind: input, shape index: {}]   ;;  %s3048_s3 = inlined_call_operand.vmem [shape: f32[1,64], index: 3, kind: input, shape index: {}]   ;;  %s3049_s4 = inlined_call_operand.vmem [shape: bf16[64,128], index: 4, kind: input, shape index: {}]   ;;  %s3050_s5 = inlined_call_operand.hbm [shape: f32[1,128], index: 5, kind: input, shape index: {}]   ;;  %s3051_s6 = inlined_call_operand.hbm [shape: f32[1,128], index: 6, kind: input, shape index: {}]   ;;  %s3052_s7 = inlined_call_operand.hbm [shape: bf16[128,1024], index: 7, kind: input, shape index: {}]   ;;  %s3053_s8 = inlined_call_operand.vmem [shape: f32[1,1024], index: 8, kind: input, shape index: {}]   ;;  %s3054_s9 = inlined_call_operand.vmem [shape: f32[1,1024], index: 9, kind: input, shape index: {}]   ;;  %s3055_s10 = inlined_call_operand.hbm [shape: f32[2,1,1024], index: 10, kind: output, shape index: {}]  }
   0x1   :  { %3065 = sst [smem:[#allocation22_spill]] %s3050_s5 }
   0x2   :  { %15 = vsyncpa [#allocation4], 0 }
   0x3   :  { %16 = vsyncpa [#allocation7], 0 }
   0x4   :  { %17 = vsyncpa [#allocation10], 0 }
   0x5   :  { %18 = vsyncpa [#allocation5], 0 }
   0x6   :  { %20 = vsyncpa [#allocation5 + $0x1], 0  ;;  %s2622_s13 = smov 0   ;;  %s2624_s14 = smov 0  }
   0x7   :  { %s2626_s15 = smov 0   ;;  %s2628_s16 = smov 0  }
   0x8   :  { %s2630_s17 = smov 0   ;;  %s2632_s18 = smov 0  }
   0x9 LB: > { %3066 = sst [smem:[#allocation16_spill]] %s2536_s13  ;;  %s2076_s19 = sadd.s32 4294967295, %s2556_s18   ;;  %s2556_s18 = sphi %s2632_s18, %s26_s18   ;;  %s2552_s17 = sphi %s2630_s17, %s3088_s17   ;;  %s2548_s16 = sphi %s2628_s16, %s3087_s16   ;;  %s2544_s15 = sphi %s2626_s15, %s3086_s15   ;;  %s2540_s14 = sphi %s2624_s14, %s3090_s14   ;;  %s2536_s13 = sphi %s2622_s13, %s3089_s13  }
   0xa   : > { %3067 = sst [smem:[#allocation17_spill]] %s2544_s15  ;;  %s2077_s20 = sadd.s32 4294967294, %s2556_s18  }
   0xb   : > { %3068 = sst [smem:[#allocation18_spill]] %s2552_s17  ;;  %s38_s21 = sadd.s32 1, %s2552_s17 }
   0xc   : > { %s262_s22 = sadd.s32 1, %s2544_s15  ;;  %p40_p0 = scmp.ge.s32.totalorder %s38_s21, 2 }
   0xd   : > { %p272_p1 = scmp.ne.s32.totalorder %s2544_s15, %s2540_s14  ;;  %p273_p2 = scmp.eq.s32.totalorder %s2076_s19, 1 }
   0xe   : > { %p278_p3 = scmp.ne.s32.totalorder %s2540_s14, %s2536_s13  ;;  %s3092_s21 = smov (%p40_p0, %s38_s21), 0 }
   0xf   : > { %3069 = sst [smem:[#allocation19_spill]] %s3092_s21  ;;  %p2662_p4 = por %p273_p2, %p272_p1 }
  0x10   : > { %p279_p5 = scmp.eq.s32.totalorder %s2077_s20, 1  ;;  %s259_s24 = ssub.s32 %s2552_s17, %s3092_s21 }
  0x11   : > { %s3070_s23 = scalar_select %p2662_p4, 1, 0 }
  0x12   : > { %p2078_p6 = scmp.ge.s32.totalorder %s2556_s18, 1  ;;  %p260_p7 = scmp.eq.s32.totalorder %s259_s24, 0 }
  0x13   : > { %p2669_p8 = por %p279_p5, %p278_p3  ;;  %p286_p9 = scmp.lt.s32.totalorder %s2556_s18, 3 }
  0x14   : > { %s2675_s26 = scalar_select %p260_p7, %s2544_s15, %s262_s22  }
  0x15   : > { %s3071_s25 = scalar_select %p2669_p8, 1, 0 }
  0x16   : > { %3073 = sst [smem:[#allocation21_spill]] %s2675_s26  ;;  %p2677_p10 = pnand %p2078_p6, %p286_p9 }
  0x17   : > { %3072 = sst [smem:[#allocation20_spill]] %s3071_s25  ;;  %p2681_p11 = scmp.eq.s32.totalorder %s2076_s19, 0 }
  0x18   : > { %s3074_s27 = scalar_select %p2677_p10, 1, 0 }
  0x19   : > { %s3075_s28 = scalar_select %p2681_p11, 1, 0 }
  0x1a   : > { %p2267_p12 = pneg %p2677_p10  ;;  %s2558_s29 = smov [#allocation6]  }
  0x1b   : > { %s319_s30 = sshll.u32 %s2558_s29, 4  ;;  %s2559_s12 = smov [#allocation3]   ;;  %s320_s30 = int_to_ptr.vmem [resolvable:$true] %s319_s30 }
  0x1c   : > { %p2689_p13 = pnand %p2681_p11, %p2267_p12  ;;  %s299_s20 = sshll.u32 %s2559_s12, 4  ;;  %s2693_s20 = int_to_ptr.vmem [resolvable:$true] %s299_s20 }
  0x1d   : > { %s3077_s5 = sld [smem:[#allocation22_spill]] }
  0x1e   : > { %p2703_p1 = pneg %p2689_p13 }
  0x23   : > { %s2354_s24 = scalar_lea.hbm %s3077_s5, 16 }
  0x24   : > { %p2355_p0 = scmp.ne.s32.totalorder %s3077_s5, %s2354_s24  ;;  %p2361_p5 = scmp.lt.u32.totalorder %s2354_s24, %s3077_s5 }
  0x26   : > { %p2357_p2 = pnand %p2703_p1, %p2355_p0 }
  0x28   : > { %p2358_p3 = pneg %p2357_p2 }
  0x2a   : > { %p2363_p6 = pnand %p2361_p5, %p2358_p3 }
  0x2c   : > { %2366 = shalt.err (!%p2363_p6)
}
  0x2d   : > { %s2367_s19 = scalar_lea.vmem %s320_s30, 16  ;;  %s2374_s17 = scalar_lea.vmem %s320_s30, 32 }
  0x2e   : > { %p2368_p7 = scmp.ne.s32.totalorder %s320_s30, %s2367_s19  ;;  %p2375_p8 = scmp.lt.s32.totalorder %s320_s30, %s320_s30 }
  0x2f   : > { %p2376_p4 = scmp.lt.s32.totalorder %s2374_s17, %s2367_s19 }
  0x30   : > { %p2370_p9 = pnand %p2368_p7, %p2703_p1 }
  0x31   : > { %p2377_p11 = por %p2376_p4, %p2375_p8 }
  0x32   : > { %p2371_p12 = pneg %p2370_p9 }
  0x34   : > { %p2378_p10 = pnand %p2377_p11, %p2371_p12 }
  0x36   : > { %2381 = shalt.err (!%p2378_p10)
}
  0x37   : > { %2273 = dma.hbm_to_vmem [thread:$0]  (!%p2689_p13), %s3077_s5, 16, %s320_s30, [#allocation7]  }
  0x38   : > { %s2382_s12 = scalar_lea.hbm %s3046_s1, 64 }
  0x39   : > { %p2383_p0 = scmp.ne.s32.totalorder %s3046_s1, %s2382_s12  ;;  %p2389_p8 = scmp.lt.u32.totalorder %s2382_s12, %s3046_s1 }
  0x3b   : > { %p2385_p2 = pnand %p2383_p0, %p2703_p1 }
  0x3d   : > { %p2386_p4 = pneg %p2385_p2 }
  0x3f   : > { %p2391_p10 = pnand %p2389_p8, %p2386_p4 }
  0x41   : > { %2394 = shalt.err (!%p2391_p10)
}
  0x42   : > { %s2395_s30 = scalar_lea.vmem %s2693_s20, 64  ;;  %p2403_p6 = scmp.lt.s32.totalorder %s2693_s20, %s2693_s20 }
  0x43   : > { %p2396_p11 = scmp.ne.s32.totalorder %s2693_s20, %s2395_s30  ;;  %p2404_p7 = scmp.lt.s32.totalorder %s2395_s30, %s2395_s30 }
  0x45   : > { %p2398_p3 = pnand %p2396_p11, %p2703_p1  ;;  %p2405_p9 = por %p2404_p7, %p2403_p6 }
  0x47   : > { %p2399_p5 = pneg %p2398_p3 }
  0x49   : > { %p2406_p12 = pnand %p2405_p9, %p2399_p5 }
  0x4b   : > { %2409 = shalt.err (!%p2406_p12)
}
  0x4c   : > { %2270 = dma.hbm_to_vmem [thread:$0]  (!%p2689_p13), %s3046_s1, 64, %s2693_s20, [#allocation4]  }
  0x4d   : > { %s2560_s21 = smov [#allocation8]   ;;  %s2561_s26 = smov [#allocation9]  }
  0x4e   : > { %s330_s22 = sshll.u32 %s2560_s21, 4  ;;  %s340_s24 = sshll.u32 %s2561_s26, 4  ;;  %s331_s22 = int_to_ptr.vmem [resolvable:$true] %s330_s22  ;;  %s341_s24 = int_to_ptr.vmem [resolvable:$true] %s340_s24 }
  0x4f   : > { %s2410_s17 = scalar_lea.hbm %s3051_s6, 16 }
  0x50   : > { %p2411_p0 = scmp.ne.s32.totalorder %s3051_s6, %s2410_s17  ;;  %p2417_p8 = scmp.lt.u32.totalorder %s2410_s17, %s3051_s6 }
  0x52   : > { %p2413_p2 = pnand %p2411_p0, %p2703_p1 }
  0x54   : > { %p2414_p4 = pneg %p2413_p2 }
  0x56   : > { %p2419_p10 = pnand %p2417_p8, %p2414_p4 }
  0x58   : > { %2422 = shalt.err (!%p2419_p10)
}
  0x59   : > { %s2423_s20 = scalar_lea.vmem %s331_s22, 16  ;;  %s2430_s25 = scalar_lea.vmem %s331_s22, 32 }
  0x5a   : > { %p2424_p11 = scmp.ne.s32.totalorder %s331_s22, %s2423_s20  ;;  %p2431_p6 = scmp.lt.s32.totalorder %s331_s22, %s331_s22 }
  0x5b   : > { %p2432_p7 = scmp.lt.s32.totalorder %s2430_s25, %s2423_s20 }
  0x5c   : > { %p2426_p3 = pnand %p2424_p11, %p2703_p1 }
  0x5d   : > { %p2433_p9 = por %p2432_p7, %p2431_p6 }
  0x5e   : > { %p2427_p5 = pneg %p2426_p3 }
  0x60   : > { %p2434_p12 = pnand %p2433_p9, %p2427_p5 }
  0x62   : > { %2437 = shalt.err (!%p2434_p12)
}
  0x63   : > { %2276 = dma.hbm_to_vmem [thread:$0]  (!%p2689_p13), %s3051_s6, 16, %s331_s22, [#allocation7]  }
  0x64   : > { %s2438_s12 = scalar_lea.hbm %s3052_s7, 8192 }
  0x65   : > { %p2439_p0 = scmp.ne.s32.totalorder %s3052_s7, %s2438_s12  ;;  %p2445_p8 = scmp.lt.u32.totalorder %s2438_s12, %s3052_s7 }
  0x67   : > { %p2441_p2 = pnand %p2439_p0, %p2703_p1 }
  0x69   : > { %p2442_p4 = pneg %p2441_p2 }
  0x6b   : > { %p2447_p10 = pnand %p2445_p8, %p2442_p4 }
  0x6d   : > { %2450 = shalt.err (!%p2447_p10)
}
  0x6e   : > { %s2451_s20 = scalar_lea.vmem %s341_s24, 8192  ;;  %p2459_p6 = scmp.lt.s32.totalorder %s341_s24, %s341_s24 }
  0x6f   : > { %p2452_p11 = scmp.ne.s32.totalorder %s341_s24, %s2451_s20  ;;  %p2460_p7 = scmp.lt.s32.totalorder %s2451_s20, %s2451_s20 }
  0x71   : > { %p2454_p3 = pnand %p2452_p11, %p2703_p1  ;;  %p2461_p9 = por %p2460_p7, %p2459_p6 }
  0x73   : > { %p2455_p5 = pneg %p2454_p3 }
  0x75   : > { %p2462_p12 = pnand %p2461_p9, %p2455_p5 }
  0x77   : > { %2465 = shalt.err (!%p2462_p12)
}
  0x78   : > { %s2562_s22 = smov 512   ;;  %s2563_s25 = smov 32  }
  0x79   : > { %2279 = dma.hbm_to_vmem [thread:$0]  (!%p2689_p13), %s3052_s7, 8192, %s341_s24, [#allocation10], %s2562_s22, %s2562_s22, %s2563_s25  }
  0x7a   : > { %p3079_p0 = scmp.ne.s32.totalorder %s3074_s27, 0 }
  0x7b   : > { %p3080_p2 = scmp.ne.s32.totalorder (!%p3079_p0), %s3075_s28, 0 }
  0x7c   : > { %372 = sbr.rel (%p3079_p0) target bundleno = 1097 (0x449), region = 60 }
  0x83   : > { %2519 = dma.done.wait (%p3080_p2), [#allocation4], 64  }
  0x84   : > { %2521 = vsyncadd (%p3080_p2), [#allocation4], 4294967232 }
  0x85   : > { %2523 = dma.done.wait (%p3080_p2), [#allocation7], 32  }
  0x86   : > { %2525 = vsyncadd (%p3080_p2), [#allocation7], 4294967264 }
  0x87   : > { %2527 = dma.done.wait (%p3080_p2), [#allocation10], 8192  }
  0x88   : > { %2529 = vsyncadd (%p3080_p2), [#allocation10], 4294959104  ;;  %p424_p13 = scmp.lt.s32.totalorder %s2548_s16, 1  ;;  %vm433_vm0 = vcmask 1045504   ;;  %v475_v2 = vld [vmem:[#allocation3] sm:$0xf] }
  0x89   : > { %vm501_vm1 = vcmask 1043456   ;;  %v2350_v4 = vld [vmem:[%s3049_s4] sm:$0xff]   ;;  %vm476_vm2 = vcmask 64512   ;;  %v2351_v29 = vld [vmem:[%s3049_s4 + $0x8] sm:$0xff]   ;;  %v2352_v30 = vld [vmem:[%s3049_s4 + $0x10] sm:$0xff]   ;;  %vm736_vm7 = vcmask 523264  }
  0x8a   : > { %s425_s27 = scalar_select %p424_p13, %s2548_s16, 1  ;;  %2248 = vmatprep.subr.msk.bf16.mxu0 %vm501_vm1, %v475_v2  ;;  %v503_v3 = vsel %vm501_vm1, %v475_v2, 0  ;;  %2224 = vmatprep.subr.bf16.mxu1 %v2350_v4  ;;  %v2353_v31 = vld [vmem:[%s3049_s4 + $0x18] sm:$0xff]   ;;  %v2820_v32 = vld [vmem:[%s3047_s2] ss:$0 sm:$0xff] }
  0x8b   : > { %2207 = vmatpush3.bf16.msra.mxu0 %v503_v3  ;;  %2225 = vmatpush3.bf16.msra.mxu1 %v2350_v4  ;;  %v2825_v34 = vld [vmem:[%s3048_s3] ss:$0 sm:$0xff]  ;;  %s2184_s26 = sshll.u32 %s2548_s16, 7  ;;  %p3081_p4 = scmp.ne.s32.totalorder %s3070_s23, 0 }
  0x8c   : > { %s2090_s11 = sshll.u32 %s425_s27, 3  ;;  %2226 = vmatprep.subr.bf16.mxu1 %v2351_v29  ;;  %s2998_s15 = scalar_lea.hbm %s3055_s10, %s2184_s26 }
  0x8d   : > { %s430_s13 = scalar_lea.vmem %s3045_s0, %s2090_s11  ;;  %s2566_s22 = smov [#allocation11]  }
  0x8e   : > { %v432_v0 = vld [vmem:[%s430_s13] sm:$0x3f]  ;;  %s421_s13 = sand.u32 1, %s2540_s14   ;;  %s2470_s25 = sshll.u32 %s2566_s22, 4  ;;  %s2471_s25 = int_to_ptr.vmem [resolvable:$false] %s2470_s25 }
  0x8f   : > { %v434_v1 = vsel %vm433_vm0, %v432_v0, 0.0  ;;  %2227 = vmatpush3.bf16.msra.mxu1 %v2351_v29  ;;  %s2089_s28 = sshll.u32 %s421_s13, 3  ;;  %s1951_s16 = scalar_lea.sflag [#allocation5], %s421_s13 }
  0x90   : > { %435 = vxpose.xlu0.b32.start.end [1/1] (short) %v434_v1, 128  ;;  %2228 = vmatprep.subr.bf16.mxu1 %v2352_v30  ;;  %s423_s12 = scalar_lea.vmem [#allocation11], %s2089_s28  ;;  %s2472_s5 = scalar_lea.vmem %s2471_s25, 256 }
  0x91   : > { %s1965_s19 = sshll.u32 %s423_s12, 4  ;;  %s3000_s19 = int_to_ptr.vmem [resolvable:$true] %s1965_s19 }
  0x92   : > { %s2466_s20 = scalar_lea.vmem %s3000_s19, 128  ;;  %p2473_p11 = scmp.lt.s32.totalorder %s3000_s19, %s2471_s25 }
  0x93   : > { %2229 = vmatpush3.bf16.msra.mxu1 %v2352_v30  ;;  %p2467_p1 = scmp.ne.s32.totalorder %s3000_s19, %s2466_s20  ;;  %p2474_p3 = scmp.lt.s32.totalorder %s2472_s5, %s2466_s20 }
  0x94   : > { %2230 = vmatprep.subr.bf16.mxu1 %v2353_v31 }
  0x95   : > { %p2468_p8 = pnand %p2467_p1, %p3081_p4  ;;  %p2475_p5 = por %p2474_p3, %p2473_p11 }
  0x97   : > { %2231 = vmatpush3.bf16.msra.mxu1 %v2353_v31  ;;  %p2469_p10 = pneg %p2468_p8 }
  0x99   : > { %p2476_p6 = pnand %p2475_p5, %p2469_p10 }
 0x110   : > { %v451_v5 = vpop.trf.xlu0 }
 0x114   : > { %v452_v6 = vpop.trf.xlu0 }
 0x115   : > { %v467_v7 = vpack.c.bf16 %v452_v6, %v451_v5 }
 0x117   : > { %2208 = vmatprep.mubr.msk.bf16.mxu0 %vm476_vm2, %v467_v7 }
 0x118   : > { %v453_v8 = vpop.trf.xlu0 }
 0x11c   : > { %v454_v9 = vpop.trf.xlu0 }
 0x11d   : > { %v468_v10 = vpack.c.bf16 %v454_v9, %v453_v8 }
 0x11f   : > { %2209 = vmatmul.mubr.msk.bf16.vlgmr.msra.gmra.mrb[0].mxu0 %vm476_vm2, %v468_v10 }
 0x120   : > { %v455_v11 = vpop.trf.xlu0 }
 0x124   : > { %v456_v12 = vpop.trf.xlu0 }
 0x125   : > { %v469_v13 = vpack.c.bf16 %v456_v12, %v455_v11 }
 0x127   : > { %2212 = vmatprep.mubr.msk.bf16.mxu0 %vm476_vm2, %v469_v13 }
 0x128   : > { %v457_v14 = vpop.trf.xlu0 }
 0x12c   : > { %v458_v15 = vpop.trf.xlu0 }
 0x12d   : > { %v470_v16 = vpack.c.bf16 %v458_v15, %v457_v14 }
 0x12f   : > { %2213 = vmatmul.mubr.msk.bf16.gmra.mrb[4].mxu0 %vm476_vm2, %v470_v16 }
 0x130   : > { %v459_v17 = vpop.trf.xlu0 }
 0x134   : > { %v460_v18 = vpop.trf.xlu0 }
 0x135   : > { %v471_v19 = vpack.c.bf16 %v460_v18, %v459_v17 }
 0x137   : > { %2216 = vmatprep.mubr.msk.bf16.mxu0 %vm476_vm2, %v471_v19 }
 0x138   : > { %v461_v20 = vpop.trf.xlu0 }
 0x13c   : > { %v462_v21 = vpop.trf.xlu0 }
 0x13d   : > { %v472_v22 = vpack.c.bf16 %v462_v21, %v461_v20 }
 0x13f   : > { %2217 = vmatmul.mubr.msk.bf16.gmra.mrb[8].mxu0 %vm476_vm2, %v472_v22 }
 0x140   : > { %v463_v23 = vpop.trf.xlu0 }
 0x144   : > { %v464_v24 = vpop.trf.xlu0 }
 0x145   : > { %v473_v25 = vpack.c.bf16 %v464_v24, %v463_v23 }
 0x147   : > { %2220 = vmatprep.mubr.msk.bf16.mxu0 %vm476_vm2, %v473_v25 }
 0x148   : > { %v465_v26 = vpop.trf.xlu0 }
 0x14c   : > { %v466_v27 = vpop.trf.xlu0 }
 0x14d   : > { %v474_v28 = vpack.c.bf16 %v466_v27, %v465_v26 }
 0x14f   : > { %2221 = vmatmul.mubr.msk.bf16.gmra.mrb[12].mxu0 %vm476_vm2, %v474_v28 }
 0x1f2   : > { %v2210_v33 = vpop.f32.mrb[0].mxu0 }
 0x1f3   : > { %v611_v35 = vmul.f32 %v2210_v33, %v2820_v32  ;;  %v539_v36 = vpop.f32.mrb[1].mxu0 }
 0x1f4   : > { %v609_v37 = vmul.f32 %v2820_v32, %v539_v36  ;;  %v2211_v38 = vpop.f32.mrb[2].mxu0 }
 0x1f5   : > { %v634_v39 = vadd.f32 %v2825_v34, %v611_v35  ;;  %v612_v40 = vmul.f32 %v2211_v38, %v2820_v32  ;;  %v542_v41 = vpop.f32.mrb[3].mxu0 }
 0x1f6   : > { %v632_v42 = vadd.f32 %v2825_v34, %v609_v37  ;;  %v610_v43 = vmul.f32 %v2820_v32, %v542_v41 }
 0x1f7   : > { %v666_v44 = vmul.f32 0.2, %v634_v39  ;;  %v635_v45 = vadd.f32 %v2825_v34, %v612_v40  ;;  %vm650_vm3 = vcmp.ge.f32.partialorder %v634_v39, 0.0 }
 0x1f8   : > { %v633_v46 = vadd.f32 %v2825_v34, %v610_v43  ;;  %v664_v47 = vmul.f32 0.2, %v632_v42  ;;  %vm648_vm5 = vcmp.ge.f32.partialorder %v632_v42, 0.0 }
 0x1f9   : > { %vm651_vm4 = vcmp.ge.f32.partialorder %v635_v45, 0.0  ;;  %v667_v48 = vmul.f32 0.2, %v635_v45  ;;  %v682_v50 = vsel %vm650_vm3, %v634_v39, %v666_v44 }
 0x1fa   : > { %vm649_vm6 = vcmp.ge.f32.partialorder %v633_v46, 0.0  ;;  %v665_v49 = vmul.f32 0.2, %v633_v46  ;;  %v680_v52 = vsel %vm648_vm5, %v632_v42, %v664_v47 }
 0x1fb   : > { %v683_v51 = vsel %vm651_vm4, %v635_v45, %v667_v48 }
 0x1fc   : > { %v681_v53 = vsel %vm649_vm6, %v633_v46, %v665_v49  ;;  %v697_v54 = vpack.c.bf16 %v683_v51, %v682_v50 }
 0x1fd   : > { %v696_v55 = vpack.c.bf16 %v681_v53, %v680_v52 }
 0x1ff   : > { %2232 = vmatprep.mubr.msk.bf16.mxu1 %vm736_vm7, %v696_v55 }
 0x200   : > { %2233 = vmatmul.mubr.msk.bf16.vlgmr.msra.gmra.mrb[0].mxu1 %vm736_vm7, %v697_v54 }
 0x202   : > { %v2214_v56 = vpop.f32.mrb[4].mxu0 }
 0x203   : > { %v615_v57 = vmul.f32 %v2214_v56, %v2820_v32  ;;  %v555_v58 = vpop.f32.mrb[5].mxu0 }
 0x204   : > { %v613_v59 = vmul.f32 %v2820_v32, %v555_v58  ;;  %v2215_v60 = vpop.f32.mrb[6].mxu0 }
 0x205   : > { %v638_v61 = vadd.f32 %v2825_v34, %v615_v57  ;;  %v616_v62 = vmul.f32 %v2215_v60, %v2820_v32  ;;  %v558_v63 = vpop.f32.mrb[7].mxu0  ;;  %v1050_v60 = vld [vmem:[#allocation9 + $0x20] sm:$0xff] }
 0x206   : > { %v636_v0 = vadd.f32 %v2825_v34, %v613_v59  ;;  %v614_v1 = vmul.f32 %v2820_v32, %v558_v63 }
 0x207   : > { %v670_v2 = vmul.f32 0.2, %v638_v61  ;;  %v639_v3 = vadd.f32 %v2825_v34, %v616_v62  ;;  %vm654_vm8 = vcmp.ge.f32.partialorder %v638_v61, 0.0 }
 0x208   : > { %v668_v4 = vmul.f32 0.2, %v636_v0  ;;  %v637_v5 = vadd.f32 %v2825_v34, %v614_v1  ;;  %vm652_vm9 = vcmp.ge.f32.partialorder %v636_v0, 0.0 }
 0x209   : > { %vm655_vm10 = vcmp.ge.f32.partialorder %v639_v3, 0.0  ;;  %v671_v6 = vmul.f32 0.2, %v639_v3  ;;  %v686_v8 = vsel %vm654_vm8, %v638_v61, %v670_v2  ;;  %v1047_v61 = vld [vmem:[#allocation9 + $0x8] sm:$0xff]  ;;  %v1054_v2 = vld [vmem:[#allocation9 + $0x40] sm:$0xff] }
 0x20a   : > { %vm653_vm11 = vcmp.ge.f32.partialorder %v637_v5, 0.0  ;;  %v669_v7 = vmul.f32 0.2, %v637_v5  ;;  %v684_v10 = vsel %vm652_vm9, %v636_v0, %v668_v4  ;;  %v1055_v4 = vld [vmem:[#allocation9 + $0x48] sm:$0xff] }
 0x20b   : > { %v687_v9 = vsel %vm655_vm10, %v639_v3, %v671_v6  ;;  %v1058_v3 = vld [vmem:[#allocation9 + $0x60] sm:$0xff]  ;;  %v1059_v6 = vld [vmem:[#allocation9 + $0x68] sm:$0xff] }
 0x20c   : > { %v685_v11 = vsel %vm653_vm11, %v637_v5, %v669_v7  ;;  %v699_v12 = vpack.c.bf16 %v687_v9, %v686_v8  ;;  %v2124_v5 = vcombine.high %v1054_v2, %v1058_v3  ;;  %v2123_v7 = vcombine.low %v1054_v2, %v1058_v3  ;;  %v2885_v3 = vld [vmem:[#allocation6] ss:$0 sm:$0xff] }
 0x20d   : > { %v698_v13 = vpack.c.bf16 %v685_v11, %v684_v10  ;;  %v2125_v8 = vcombine.low %v1055_v4, %v1059_v6  ;;  %v2126_v9 = vcombine.high %v1055_v4, %v1059_v6  ;;  %v1062_v10 = vld [vmem:[#allocation9 + $0x80] sm:$0xff] }
 0x20e   : > { %v1066_v11 = vld [vmem:[#allocation9 + $0xa0] sm:$0xff] }
 0x20f   : > { %2236 = vmatprep.mubr.msk.bf16.mxu1 %vm736_vm7, %v698_v13  ;;  %v2132_v13 = vcombine.high %v1062_v10, %v1066_v11 }
 0x210   : > { %2237 = vmatmul.mubr.msk.bf16.gmra.mrb[4].mxu1 %vm736_vm7, %v699_v12  ;;  %v1063_v12 = vld [vmem:[#allocation9 + $0x88] sm:$0xff] }
 0x212   : > { %v2218_v14 = vpop.f32.mrb[8].mxu0 }
 0x213   : > { %v619_v15 = vmul.f32 %v2218_v14, %v2820_v32  ;;  %v571_v16 = vpop.f32.mrb[9].mxu0  ;;  %v1067_v14 = vld [vmem:[#allocation9 + $0xa8] sm:$0xff] }
 0x214   : > { %v617_v17 = vmul.f32 %v2820_v32, %v571_v16  ;;  %v2219_v18 = vpop.f32.mrb[10].mxu0  ;;  %v2133_v16 = vcombine.low %v1063_v12, %v1067_v14 }
 0x215   : > { %v642_v19 = vadd.f32 %v2825_v34, %v619_v15  ;;  %v620_v20 = vmul.f32 %v2219_v18, %v2820_v32  ;;  %v574_v21 = vpop.f32.mrb[11].mxu0  ;;  %v2131_v15 = vcombine.low %v1062_v10, %v1066_v11  ;;  %v1070_v18 = vld [vmem:[#allocation9 + $0xc0] sm:$0xff] }
 0x216   : > { %v640_v22 = vadd.f32 %v2825_v34, %v617_v17  ;;  %v618_v23 = vmul.f32 %v2820_v32, %v574_v21  ;;  %v2134_v17 = vcombine.high %v1063_v12, %v1067_v14 }
 0x217   : > { %v674_v24 = vmul.f32 0.2, %v642_v19  ;;  %v643_v25 = vadd.f32 %v2825_v34, %v620_v20  ;;  %vm658_vm12 = vcmp.ge.f32.partialorder %v642_v19, 0.0  ;;  %v1071_v20 = vld [vmem:[#allocation9 + $0xc8] sm:$0xff] }
 0x218   : > { %v672_v26 = vmul.f32 0.2, %v640_v22  ;;  %v641_v27 = vadd.f32 %v2825_v34, %v618_v23  ;;  %vm656_vm13 = vcmp.ge.f32.partialorder %v640_v22, 0.0 }
 0x219   : > { %vm659_vm14 = vcmp.ge.f32.partialorder %v643_v25, 0.0  ;;  %v675_v28 = vmul.f32 0.2, %v643_v25  ;;  %v690_v30 = vsel %vm658_vm12, %v642_v19, %v674_v24  ;;  %v1074_v19 = vld [vmem:[#allocation9 + $0xe0] sm:$0xff] }
 0x21a   : > { %vm657_vm15 = vcmp.ge.f32.partialorder %v641_v27, 0.0  ;;  %v673_v29 = vmul.f32 0.2, %v641_v27  ;;  %v688_v33 = vsel %vm656_vm13, %v640_v22, %v672_v26  ;;  %v2140_v21 = vcombine.high %v1070_v18, %v1074_v19  ;;  %v1075_v22 = vld [vmem:[#allocation9 + $0xe8] sm:$0xff]  ;;  %v1078_v26 = vld [vmem:[#allocation9 + $0x100] sm:$0xff] }
 0x21b   : > { %v691_v31 = vsel %vm659_vm14, %v643_v25, %v675_v28  ;;  %v2139_v23 = vcombine.low %v1070_v18, %v1074_v19  ;;  %v2141_v24 = vcombine.low %v1071_v20, %v1075_v22  ;;  %v2142_v25 = vcombine.high %v1071_v20, %v1075_v22  ;;  %v1079_v28 = vld [vmem:[#allocation9 + $0x108] sm:$0xff] }
 0x21c   : > { %v689_v35 = vsel %vm657_vm15, %v641_v27, %v673_v29  ;;  %v701_v36 = vpack.c.bf16 %v691_v31, %v690_v30  ;;  %v1082_v27 = vld [vmem:[#allocation9 + $0x120] sm:$0xff]  ;;  %v1083_v30 = vld [vmem:[#allocation9 + $0x128] sm:$0xff] }
 0x21d   : > { %v700_v37 = vpack.c.bf16 %v689_v35, %v688_v33  ;;  %v2148_v29 = vcombine.high %v1078_v26, %v1082_v27  ;;  %v2147_v31 = vcombine.low %v1078_v26, %v1082_v27  ;;  %v2149_v33 = vcombine.low %v1079_v28, %v1083_v30 }
 0x21e   : > { %v2150_v35 = vcombine.high %v1079_v28, %v1083_v30 }
 0x21f   : > { %2240 = vmatprep.mubr.msk.bf16.mxu1 %vm736_vm7, %v700_v37  ;;  %v1090_v37 = vld [vmem:[#allocation9 + $0x160] sm:$0xff] }
 0x220   : > { %2241 = vmatmul.mubr.msk.bf16.gmra.mrb[8].mxu1 %vm736_vm7, %v701_v36  ;;  %v1086_v36 = vld [vmem:[#allocation9 + $0x140] sm:$0xff] }
 0x222   : > { %v2222_v38 = vpop.f32.mrb[12].mxu0 }
 0x223   : > { %v623_v39 = vmul.f32 %v2222_v38, %v2820_v32  ;;  %v587_v40 = vpop.f32.mrb[13].mxu0  ;;  %v1087_v38 = vld [vmem:[#allocation9 + $0x148] sm:$0xff] }
 0x224   : > { %v621_v41 = vmul.f32 %v2820_v32, %v587_v40  ;;  %v2223_v42 = vpop.f32.mrb[14].mxu0  ;;  %v1091_v40 = vld [vmem:[#allocation9 + $0x168] sm:$0xff] }
 0x225   : > { %v646_v43 = vadd.f32 %v2825_v34, %v623_v39  ;;  %v624_v44 = vmul.f32 %v2223_v42, %v2820_v32  ;;  %v590_v45 = vpop.f32.mrb[15].mxu0  ;;  %v2156_v39 = vcombine.high %v1086_v36, %v1090_v37  ;;  %v1098_v42 = vld [vmem:[#allocation9 + $0x1a0] sm:$0xff] }
 0x226   : > { %v644_v46 = vadd.f32 %v2825_v34, %v621_v41  ;;  %v622_v47 = vmul.f32 %v2820_v32, %v590_v45  ;;  %v1046_v32 = vld [vmem:[#allocation9] sm:$0xff]  ;;  %v2158_v45 = vcombine.high %v1087_v38, %v1091_v40 }
 0x227   : > { %v678_v48 = vmul.f32 0.2, %v646_v43  ;;  %v647_v49 = vadd.f32 %v2825_v34, %v624_v44  ;;  %vm662_vm0 = vcmp.ge.f32.partialorder %v646_v43, 0.0  ;;  %v2116_v62 = vcombine.high %v1046_v32, %v1050_v60  ;;  %v1094_v41 = vld [vmem:[#allocation9 + $0x180] sm:$0xff] }
 0x228   : > { %v676_v50 = vmul.f32 0.2, %v644_v46  ;;  %v645_v51 = vadd.f32 %v2825_v34, %v622_v47  ;;  %vm660_vm1 = vcmp.ge.f32.partialorder %v644_v46, 0.0  ;;  %v1051_v34 = vld [vmem:[#allocation9 + $0x28] sm:$0xff]  ;;  %v2115_v63 = vcombine.low %v1046_v32, %v1050_v60 }
 0x229   : > { %vm663_vm2 = vcmp.ge.f32.partialorder %v647_v49, 0.0  ;;  %v679_v52 = vmul.f32 0.2, %v647_v49  ;;  %v694_v54 = vsel %vm662_vm0, %v646_v43, %v678_v48  ;;  %v2117_v0 = vcombine.low %v1047_v61, %v1051_v34  ;;  %1430 = vmatprep.subr.bf16.mxu0 %v2116_v62  ;;  %v1099_v47 = vld [vmem:[#allocation9 + $0x1a8] sm:$0xff] }
 0x22a   : > { %vm661_vm3 = vcmp.ge.f32.partialorder %v645_v51, 0.0  ;;  %v677_v53 = vmul.f32 0.2, %v645_v51  ;;  %v692_v56 = vsel %vm660_vm1, %v644_v46, %v676_v50  ;;  %v2118_v1 = vcombine.high %v1047_v61, %v1051_v34  ;;  %1431 = vmatpush1.bf16.msra.mxu0 %v2115_v63  ;;  %v1095_v46 = vld [vmem:[#allocation9 + $0x188] sm:$0xff]  ;;  %v1102_v50 = vld [vmem:[#allocation9 + $0x1c0] sm:$0xff] }
 0x22b   : > { %v695_v55 = vsel %vm663_vm2, %v647_v49, %v679_v52  ;;  %1432 = vmatprep.subr.bf16.mxu0 %v2124_v5  ;;  %v2564_v43 = vmov 0   ;;  %v2155_v44 = vcombine.low %v1086_v36, %v1090_v37  ;;  %v2157_v48 = vcombine.low %v1087_v38, %v1091_v40  ;;  %v2887_v5 = vld [vmem:[#allocation8] ss:$0 sm:$0xff] }
 0x22c   : > { %v693_v57 = vsel %vm661_vm3, %v645_v51, %v677_v53  ;;  %v703_v58 = vpack.c.bf16 %v695_v55, %v694_v54  ;;  %1473 = vmatprep.subr.bf16.mxu1 %v2118_v1  ;;  %1462 = vmatprep.mubr.bf16.mxu0 %v2564_v43  ;;  %v2164_v49 = vcombine.high %v1094_v41, %v1098_v42  ;;  %v1106_v51 = vld [vmem:[#allocation9 + $0x1e0] sm:$0xff]  ;;  %v2868_v53 = vld [vmem:[#allocation9 + $0x10] sm:$0xff]  ;;  %v2872_v55 = vld [vmem:[#allocation9 + $0x18] sm:$0xff] }
 0x22d   : > { %v702_v59 = vpack.c.bf16 %v693_v57, %v692_v56  ;;  %1474 = vmatpush1.bf16.msra.mxu1 %v2117_v0  ;;  %v2166_v52 = vcombine.high %v1095_v46, %v1099_v47  ;;  %v2870_v54 = vld [vmem:[#allocation9 + $0x30] sm:$0xff]  ;;  %v1103_v56 = vld [vmem:[#allocation9 + $0x1c8] sm:$0xff]  ;;  %v2163_v32 = vcombine.low %v1094_v41, %v1098_v42  ;;  %v2165_v61 = vcombine.low %v1095_v46, %v1099_v47 }
 0x22e   : > { %1475 = vmatprep.subr.bf16.mxu1 %v2126_v9  ;;  %1433 = vmatpush1.bf16.msra.mxu0 %v2123_v7  ;;  %v1107_v57 = vld [vmem:[#allocation9 + $0x1e8] sm:$0xff]  ;;  %v2172_v62 = vcombine.high %v1102_v50, %v1106_v51  ;;  %v2171_v63 = vcombine.low %v1102_v50, %v1106_v51  ;;  %v2120_v1 = vcombine.high %v2868_v53, %v2870_v54 }
 0x22f   : > { %2244 = vmatprep.mubr.msk.bf16.mxu1 %vm736_vm7, %v702_v59  ;;  %1434 = vmatprep.subr.bf16.mxu0 %v2132_v13  ;;  %v2877_v59 = vld [vmem:[#allocation9 + $0x38] sm:$0xff]  ;;  %v2174_v34 = vcombine.high %v1103_v56, %v1107_v57  ;;  %v2173_v0 = vcombine.low %v1103_v56, %v1107_v57 }
 0x230   : > { %2245 = vmatmul.mubr.msk.bf16.gmra.mrb[12].mxu1 %vm736_vm7, %v703_v58  ;;  %v2119_v58 = vcombine.low %v2868_v53, %v2870_v54  ;;  %v2121_v60 = vcombine.low %v2872_v55, %v2877_v59  ;;  %v2122_v2 = vcombine.high %v2872_v55, %v2877_v59  ;;  %v1080_v59 = vld [vmem:[#allocation9 + $0x110] sm:$0xff] }
 0x231   : > { %1476 = vmatpush1.bf16.msra.mxu1 %v2125_v8  ;;  %1505 = vmatprep.mubr.bf16.mxu1 %v2564_v43 }
 0x232   : > { %1477 = vmatprep.subr.bf16.mxu1 %v2134_v17  ;;  %1435 = vmatpush1.bf16.msra.mxu0 %v2131_v15 }
 0x233   : > { %1436 = vmatprep.subr.bf16.mxu0 %v2140_v21 }
 0x235   : > { %1478 = vmatpush1.bf16.msra.mxu1 %v2133_v16 }
 0x236   : > { %1479 = vmatprep.subr.bf16.mxu1 %v2142_v25  ;;  %1437 = vmatpush1.bf16.msra.mxu0 %v2139_v23 }
 0x237   : > { %1438 = vmatprep.subr.bf16.mxu0 %v2148_v29 }
 0x239   : > { %1480 = vmatpush1.bf16.msra.mxu1 %v2141_v24 }
 0x23a   : > { %1481 = vmatprep.subr.bf16.mxu1 %v2150_v35  ;;  %1439 = vmatpush1.bf16.msra.mxu0 %v2147_v31 }
 0x23b   : > { %1440 = vmatprep.subr.bf16.mxu0 %v2156_v39 }
 0x23d   : > { %1482 = vmatpush1.bf16.msra.mxu1 %v2149_v33 }
 0x23e   : > { %1483 = vmatprep.subr.bf16.mxu1 %v2158_v45  ;;  %1441 = vmatpush1.bf16.msra.mxu0 %v2155_v44 }
 0x23f   : > { %1442 = vmatprep.subr.bf16.mxu0 %v2164_v49 }
 0x241   : > { %1484 = vmatpush1.bf16.msra.mxu1 %v2157_v48 }
 0x242   : > { %1485 = vmatprep.subr.bf16.mxu1 %v2166_v52  ;;  %1443 = vmatpush1.bf16.msra.mxu0 %v2163_v32 }
 0x243   : > { %1444 = vmatprep.subr.bf16.mxu0 %v2172_v62 }
 0x245   : > { %1486 = vmatpush1.bf16.msra.mxu1 %v2165_v61 }
 0x246   : > { %1487 = vmatprep.subr.bf16.mxu1 %v2174_v34  ;;  %1445 = vmatpush1.bf16.msra.mxu0 %v2171_v63 }
 0x247   : > { %1516 = vmatprep.subr.bf16.mxu0 %v2120_v1 }
 0x249   : > { %1488 = vmatpush1.bf16.msra.mxu1 %v2173_v0 }
 0x24a   : > { %1559 = vmatprep.subr.bf16.mxu1 %v2122_v2 }
 0x2d3   : > { %v2234_v4 = vpop.f32.mrb[0].mxu1 }
 0x2d4   : > { %v867_v6 = vmul.f32 %v2234_v4, %v2885_v3  ;;  %v795_v7 = vpop.f32.mrb[1].mxu1 }
 0x2d5   : > { %v865_v8 = vmul.f32 %v2885_v3, %v795_v7  ;;  %v2235_v9 = vpop.f32.mrb[2].mxu1 }
 0x2d6   : > { %v890_v10 = vadd.f32 %v2887_v5, %v867_v6  ;;  %v868_v11 = vmul.f32 %v2235_v9, %v2885_v3  ;;  %v798_v12 = vpop.f32.mrb[3].mxu1 }
 0x2d7   : > { %v888_v13 = vadd.f32 %v2887_v5, %v865_v8  ;;  %v866_v14 = vmul.f32 %v2885_v3, %v798_v12 }
 0x2d8   : > { %vm906_vm4 = vcmp.ge.f32.partialorder %v890_v10, 0.0  ;;  %v922_v15 = vmul.f32 0.2, %v890_v10  ;;  %v891_v16 = vadd.f32 %v2887_v5, %v868_v11 }
 0x2d9   : > { %vm904_vm5 = vcmp.ge.f32.partialorder %v888_v13, 0.0  ;;  %v920_v17 = vmul.f32 0.2, %v888_v13  ;;  %v889_v18 = vadd.f32 %v2887_v5, %v866_v14 }
 0x2da   : > { %v938_v19 = vsel %vm906_vm4, %v890_v10, %v922_v15  ;;  %vm907_vm6 = vcmp.ge.f32.partialorder %v891_v16, 0.0  ;;  %v923_v20 = vmul.f32 0.2, %v891_v16 }
 0x2db   : > { %954 = vst [vmem:[#allocation2 + $0x10] sm:$0xff] %v938_v19  ;;  %v936_v21 = vsel %vm904_vm5, %v888_v13, %v920_v17  ;;  %vm905_vm7 = vcmp.ge.f32.partialorder %v889_v18, 0.0  ;;  %v921_v22 = vmul.f32 0.2, %v889_v18 }
 0x2dc   : > { %952 = vst [vmem:[#allocation2] sm:$0xff] %v936_v21  ;;  %v939_v23 = vsel %vm907_vm6, %v891_v16, %v923_v20 }
 0x2dd   : > { %955 = vst [vmem:[#allocation2 + $0x18] sm:$0xff] %v939_v23  ;;  %v937_v24 = vsel %vm905_vm7, %v889_v18, %v921_v22 }
 0x2de   : > { %953 = vst [vmem:[#allocation2 + $0x8] sm:$0xff] %v937_v24 }
 0x2e3   : > { %v2238_v25 = vpop.f32.mrb[4].mxu1 }
 0x2e4   : > { %v871_v26 = vmul.f32 %v2238_v25, %v2885_v3  ;;  %v811_v27 = vpop.f32.mrb[5].mxu1 }
 0x2e5   : > { %v869_v28 = vmul.f32 %v2885_v3, %v811_v27  ;;  %v2239_v29 = vpop.f32.mrb[6].mxu1 }
 0x2e6   : > { %v894_v30 = vadd.f32 %v2887_v5, %v871_v26  ;;  %v872_v31 = vmul.f32 %v2239_v29, %v2885_v3  ;;  %v814_v33 = vpop.f32.mrb[7].mxu1 }
 0x2e7   : > { %v892_v35 = vadd.f32 %v2887_v5, %v869_v28  ;;  %v870_v36 = vmul.f32 %v2885_v3, %v814_v33 }
 0x2e8   : > { %vm910_vm8 = vcmp.ge.f32.partialorder %v894_v30, 0.0  ;;  %v926_v37 = vmul.f32 0.2, %v894_v30  ;;  %v895_v38 = vadd.f32 %v2887_v5, %v872_v31 }
 0x2e9   : > { %vm908_vm9 = vcmp.ge.f32.partialorder %v892_v35, 0.0  ;;  %v924_v39 = vmul.f32 0.2, %v892_v35  ;;  %v893_v40 = vadd.f32 %v2887_v5, %v870_v36  ;;  %v976_v36 = vld [vmem:[#allocation2 + $0x1] ss:$8 sm:$0xf] }
 0x2ea   : > { %v942_v41 = vsel %vm910_vm8, %v894_v30, %v926_v37  ;;  %vm911_vm10 = vcmp.ge.f32.partialorder %v895_v38, 0.0  ;;  %v927_v42 = vmul.f32 0.2, %v895_v38  ;;  %v984_v37 = vld [vmem:[#allocation2 + $0x2] ss:$8 sm:$0xf] }
 0x2eb   : > { %958 = vst [vmem:[#allocation2 + $0x30] sm:$0xff] %v942_v41  ;;  %v940_v44 = vsel %vm908_vm9, %v892_v35, %v924_v39  ;;  %vm909_vm11 = vcmp.ge.f32.partialorder %v893_v40, 0.0  ;;  %v925_v45 = vmul.f32 0.2, %v893_v40 }
 0x2ec   : > { %956 = vst [vmem:[#allocation2 + $0x20] sm:$0xff] %v940_v44  ;;  %v943_v46 = vsel %vm911_vm10, %v895_v38, %v927_v42  ;;  %v968_v35 = vld [vmem:[#allocation2] ss:$8 sm:$0xf] }
 0x2ed   : > { %959 = vst [vmem:[#allocation2 + $0x38] sm:$0xff] %v943_v46  ;;  %v941_v47 = vsel %vm909_vm11, %v893_v40, %v925_v45  ;;  %v1000_v42 = vld [vmem:[#allocation2 + $0x4] ss:$8 sm:$0xf] }
 0x2ee   : > { %957 = vst [vmem:[#allocation2 + $0x28] sm:$0xff] %v941_v47  ;;  %v1008_v44 = vld [vmem:[#allocation2 + $0x5] ss:$8 sm:$0xf] }
 0x2f3   : > { %v2242_v48 = vpop.f32.mrb[8].mxu1 }
 0x2f4   : > { %v875_v49 = vmul.f32 %v2242_v48, %v2885_v3  ;;  %v827_v50 = vpop.f32.mrb[9].mxu1 }
 0x2f5   : > { %v873_v51 = vmul.f32 %v2885_v3, %v827_v50  ;;  %v2243_v52 = vpop.f32.mrb[10].mxu1  ;;  %v977_v30 = vld [vmem:[#allocation2 + $0x1] ss:$8 sm:$0xf0] }
 0x2f6   : > { %v898_v56 = vadd.f32 %v2887_v5, %v875_v49  ;;  %v876_v57 = vmul.f32 %v2243_v52, %v2885_v3  ;;  %v830_v32 = vpop.f32.mrb[11].mxu1  ;;  %v985_v31 = vld [vmem:[#allocation2 + $0x2] ss:$8 sm:$0xf0]  ;;  %v978_v46 = vor.u32 %v977_v30, %v976_v36 }
 0x2f7   : > { %v896_v61 = vadd.f32 %v2887_v5, %v873_v51  ;;  %v874_v62 = vmul.f32 %v2885_v3, %v830_v32  ;;  %v993_v33 = vld [vmem:[#allocation2 + $0x3] ss:$8 sm:$0xf0]  ;;  %v1001_v38 = vld [vmem:[#allocation2 + $0x4] ss:$8 sm:$0xf0]  ;;  %v986_v47 = vor.u32 %v985_v31, %v984_v37 }
 0x2f8   : > { %vm914_vm12 = vcmp.ge.f32.partialorder %v898_v56, 0.0  ;;  %v930_v34 = vmul.f32 0.2, %v898_v56  ;;  %v899_v63 = vadd.f32 %v2887_v5, %v876_v57  ;;  %v1009_v39 = vld [vmem:[#allocation2 + $0x5] ss:$8 sm:$0xf0] }
 0x2f9   : > { %vm912_vm13 = vcmp.ge.f32.partialorder %v896_v61, 0.0  ;;  %v928_v0 = vmul.f32 0.2, %v896_v61  ;;  %v897_v1 = vadd.f32 %v2887_v5, %v874_v62  ;;  %v1017_v40 = vld [vmem:[#allocation2 + $0x6] ss:$8 sm:$0xf0]  ;;  %v1010_v57 = vor.u32 %v1009_v39, %v1008_v44 }
 0x2fa   : > { %v946_v2 = vsel %vm914_vm12, %v898_v56, %v930_v34  ;;  %vm915_vm14 = vcmp.ge.f32.partialorder %v899_v63, 0.0  ;;  %v931_v4 = vmul.f32 0.2, %v899_v63  ;;  %v1025_v41 = vld [vmem:[#allocation2 + $0x7] ss:$8 sm:$0xf0]  ;;  %v1002_v56 = vor.u32 %v1001_v38, %v1000_v42 }
 0x2fb   : > { %962 = vst [vmem:[#allocation2 + $0x50] sm:$0xff] %v946_v2  ;;  %v944_v6 = vsel %vm912_vm13, %v896_v61, %v928_v0  ;;  %vm913_vm15 = vcmp.ge.f32.partialorder %v897_v1, 0.0  ;;  %v929_v7 = vmul.f32 0.2, %v897_v1  ;;  %v1057_v36 = vld [vmem:[#allocation9 + $0x58] sm:$0xff]  ;;  %v1064_v42 = vld [vmem:[#allocation9 + $0x90] sm:$0xff] }
 0x2fc   : > { %960 = vst [vmem:[#allocation2 + $0x40] sm:$0xff] %v944_v6  ;;  %v947_v8 = vsel %vm915_vm14, %v899_v63, %v931_v4  ;;  %v1016_v49 = vld [vmem:[#allocation2 + $0x6] ss:$8 sm:$0xf] }
 0x2fd   : > { %963 = vst [vmem:[#allocation2 + $0x58] sm:$0xff] %v947_v8  ;;  %v945_v9 = vsel %vm913_vm15, %v897_v1, %v929_v7  ;;  %v1024_v50 = vld [vmem:[#allocation2 + $0x7] ss:$8 sm:$0xf]  ;;  %v1018_v32 = vor.u32 %v1017_v40, %v1016_v49 }
 0x2fe   : > { %961 = vst [vmem:[#allocation2 + $0x48] sm:$0xff] %v945_v9  ;;  %v1026_v61 = vor.u32 %v1025_v41, %v1024_v50  ;;  %v1061_v37 = vld [vmem:[#allocation9 + $0x78] sm:$0xff]  ;;  %v1068_v44 = vld [vmem:[#allocation9 + $0xb0] sm:$0xff] }
 0x2ff   : > { %v2130_v41 = vcombine.high %v1057_v36, %v1061_v37  ;;  %v2136_v49 = vcombine.high %v1064_v42, %v1068_v44  ;;  %v2135_v53 = vcombine.low %v1064_v42, %v1068_v44 }
 0x303   : > { %v2246_v10 = vpop.f32.mrb[12].mxu1 }
 0x304   : > { %v879_v11 = vmul.f32 %v2246_v10, %v2885_v3  ;;  %v843_v12 = vpop.f32.mrb[13].mxu1 }
 0x305   : > { %v877_v13 = vmul.f32 %v2885_v3, %v843_v12  ;;  %v2247_v14 = vpop.f32.mrb[14].mxu1  ;;  %v972_v51 = vld [vmem:[#allocation2 + $0x40] ss:$8 sm:$0xf] }
 0x306   : > { %v902_v15 = vadd.f32 %v2887_v5, %v879_v11  ;;  %v880_v16 = vmul.f32 %v2247_v14, %v2885_v3  ;;  %v846_v17 = vpop.f32.mrb[15].mxu1  ;;  %v980_v52 = vld [vmem:[#allocation2 + $0x41] ss:$8 sm:$0xf] }
 0x307   : > { %v900_v18 = vadd.f32 %v2887_v5, %v877_v13  ;;  %v878_v19 = vmul.f32 %v2885_v3, %v846_v17  ;;  %v969_v3 = vld [vmem:[#allocation2] ss:$8 sm:$0xf0]  ;;  %v988_v62 = vld [vmem:[#allocation2 + $0x42] ss:$8 sm:$0xf]  ;;  %v1035_v17 = vmax.f32 %v1002_v56, %v1010_v57 }
 0x308   : > { %vm918_vm0 = vcmp.ge.f32.partialorder %v902_v15, 0.0  ;;  %v934_v20 = vmul.f32 0.2, %v902_v15  ;;  %v903_v21 = vadd.f32 %v2887_v5, %v880_v16  ;;  %v970_v45 = vor.u32 %v969_v3, %v968_v35  ;;  %v996_v34 = vld [vmem:[#allocation2 + $0x43] ss:$8 sm:$0xf] }
 0x309   : > { %vm916_vm1 = vcmp.ge.f32.partialorder %v900_v18, 0.0  ;;  %v932_v22 = vmul.f32 0.2, %v900_v18  ;;  %v901_v23 = vadd.f32 %v2887_v5, %v878_v19  ;;  %v992_v5 = vld [vmem:[#allocation2 + $0x3] ss:$8 sm:$0xf] }
 0x30a   : > { %v950_v24 = vsel %vm918_vm0, %v902_v15, %v934_v20  ;;  %vm919_vm2 = vcmp.ge.f32.partialorder %v903_v21, 0.0  ;;  %v935_v25 = vmul.f32 0.2, %v903_v21  ;;  %v994_v48 = vor.u32 %v993_v33, %v992_v5  ;;  %v1004_v1 = vld [vmem:[#allocation2 + $0x44] ss:$8 sm:$0xf] }
 0x30b   : > { %966 = vst [vmem:[#allocation2 + $0x70] sm:$0xff] %v950_v24  ;;  %v948_v26 = vsel %vm916_vm1, %v900_v18, %v932_v22  ;;  %vm917_vm3 = vcmp.ge.f32.partialorder %v901_v23, 0.0  ;;  %v933_v27 = vmul.f32 0.2, %v901_v23  ;;  %v1031_v11 = vmax.f32 %v970_v45, %v978_v46  ;;  %v1056_v33 = vld [vmem:[#allocation9 + $0x50] sm:$0xff]  ;;  %v1065_v45 = vld [vmem:[#allocation9 + $0x98] sm:$0xff] }
 0x30c   : > { %964 = vst [vmem:[#allocation2 + $0x60] sm:$0xff] %v948_v26  ;;  %v951_v28 = vsel %vm919_vm2, %v903_v21, %v935_v25  ;;  %v1012_v2 = vld [vmem:[#allocation2 + $0x45] ss:$8 sm:$0xf]  ;;  %v1033_v12 = vmax.f32 %v986_v47, %v994_v48  ;;  %v1037_v18 = vmax.f32 %v1018_v32, %v1026_v61  ;;  %v2129_v48 = vcombine.low %v1057_v36, %v1061_v37 }
 0x30d   : > { %967 = vst [vmem:[#allocation2 + $0x78] sm:$0xff] %v951_v28  ;;  %v949_v29 = vsel %vm917_vm3, %v901_v23, %v933_v27  ;;  %v1020_v9 = vld [vmem:[#allocation2 + $0x46] ss:$8 sm:$0xf] }
 0x30e   : > { %965 = vst [vmem:[#allocation2 + $0x68] sm:$0xff] %v949_v29  ;;  %v1028_v10 = vld [vmem:[#allocation2 + $0x47] ss:$8 sm:$0xf]  ;;  %v1039_v29 = vmax.f32 %v1031_v11, %v1033_v12  ;;  %v1041_v30 = vmax.f32 %v1035_v17, %v1037_v18 }
 0x30f   : > { %v1060_v35 = vld [vmem:[#allocation9 + $0x70] sm:$0xff]  ;;  %v1069_v46 = vld [vmem:[#allocation9 + $0xb8] sm:$0xff]  ;;  %v2949_v36 = vld [vmem:[%s3054_s9] sm:$0xff] }
 0x310   : > { %v1043_v5 = vmax.f32 %v1039_v29, %v1041_v30  ;;  %v2128_v40 = vcombine.high %v1056_v33, %v1060_v35  ;;  %v2127_v47 = vcombine.low %v1056_v33, %v1060_v35  ;;  %v2138_v50 = vcombine.high %v1065_v45, %v1069_v46  ;;  %v1073_v56 = vld [vmem:[#allocation9 + $0xd8] sm:$0xff]  ;;  %v1100_v11 = vld [vmem:[#allocation9 + $0x1b0] sm:$0xff] }
 0x311   : > { %v1077_v57 = vld [vmem:[#allocation9 + $0xf8] sm:$0xff]  ;;  %v2137_v54 = vcombine.low %v1065_v45, %v1069_v46  ;;  %v1104_v18 = vld [vmem:[#allocation9 + $0x1d0] sm:$0xff] }
 0x312   : > { %v1081_v32 = vld [vmem:[#allocation9 + $0x118] sm:$0xff] }
 0x313   : > { %v1085_v61 = vld [vmem:[#allocation9 + $0x138] sm:$0xff] }
 0x314   : > { %v1097_v12 = vld [vmem:[#allocation9 + $0x198] sm:$0xff] }
 0x315   : > { %v973_v63 = vld [vmem:[#allocation2 + $0x40] ss:$8 sm:$0xf0]  ;;  %v981_v0 = vld [vmem:[#allocation2 + $0x41] ss:$8 sm:$0xf0] }
 0x316   : > { %v974_v4 = vor.u32 %v973_v63, %v972_v51  ;;  %v982_v6 = vor.u32 %v981_v0, %v980_v52  ;;  %v989_v7 = vld [vmem:[#allocation2 + $0x42] ss:$8 sm:$0xf0]  ;;  %v997_v8 = vld [vmem:[#allocation2 + $0x43] ss:$8 sm:$0xf0] }
 0x317   : > { %v990_v13 = vor.u32 %v989_v7, %v988_v62  ;;  %v998_v14 = vor.u32 %v997_v8, %v996_v34  ;;  %v1005_v15 = vld [vmem:[#allocation2 + $0x44] ss:$8 sm:$0xf0]  ;;  %v1013_v16 = vld [vmem:[#allocation2 + $0x45] ss:$8 sm:$0xf0]  ;;  %v2145_v34 = vcombine.low %v1073_v56, %v1077_v57  ;;  %v2153_v7 = vcombine.low %v1081_v32, %v1085_v61 }
 0x318   : > { %v1006_v19 = vor.u32 %v1005_v15, %v1004_v1  ;;  %v1014_v20 = vor.u32 %v1013_v16, %v1012_v2  ;;  %v1021_v21 = vld [vmem:[#allocation2 + $0x46] ss:$8 sm:$0xf0]  ;;  %v1029_v22 = vld [vmem:[#allocation2 + $0x47] ss:$8 sm:$0xf0]  ;;  %v1032_v23 = vmax.f32 %v974_v4, %v982_v6 }
 0x319   : > { %v1022_v24 = vor.u32 %v1021_v21, %v1020_v9  ;;  %v1030_v25 = vor.u32 %v1029_v22, %v1028_v10  ;;  %v1034_v26 = vmax.f32 %v990_v13, %v998_v14  ;;  %v1072_v51 = vld [vmem:[#allocation9 + $0xd0] sm:$0xff]  ;;  %v1089_v2 = vld [vmem:[#allocation9 + $0x158] sm:$0xff] }
 0x31a   : > { %v1036_v27 = vmax.f32 %v1006_v19, %v1014_v20  ;;  %v1076_v52 = vld [vmem:[#allocation9 + $0xf0] sm:$0xff]  ;;  %v1093_v4 = vld [vmem:[#allocation9 + $0x178] sm:$0xff] }
 0x31b   : > { %v1038_v28 = vmax.f32 %v1022_v24, %v1030_v25  ;;  %v1040_v3 = vmax.f32 %v1032_v23, %v1034_v26  ;;  %v2144_v55 = vcombine.high %v1072_v51, %v1076_v52  ;;  %v2143_v62 = vcombine.low %v1072_v51, %v1076_v52  ;;  %v1088_v0 = vld [vmem:[#allocation9 + $0x150] sm:$0xff]  ;;  %v1101_v13 = vld [vmem:[#allocation9 + $0x1b8] sm:$0xff] }
 0x31c   : > { %v1092_v1 = vld [vmem:[#allocation9 + $0x170] sm:$0xff]  ;;  %v2162_v9 = vcombine.high %v1089_v2, %v1093_v4  ;;  %v2161_v15 = vcombine.low %v1089_v2, %v1093_v4  ;;  %v2170_v17 = vcombine.high %v1097_v12, %v1101_v13  ;;  %v1105_v20 = vld [vmem:[#allocation9 + $0x1d8] sm:$0xff]  ;;  %v2169_v23 = vcombine.low %v1097_v12, %v1101_v13 }
 0x31d   : > { %v1042_v31 = vmax.f32 %v1036_v27, %v1038_v28  ;;  %v2160_v8 = vcombine.high %v1088_v0, %v1092_v1  ;;  %v1096_v10 = vld [vmem:[#allocation9 + $0x190] sm:$0xff]  ;;  %v2159_v14 = vcombine.low %v1088_v0, %v1092_v1  ;;  %v1109_v21 = vld [vmem:[#allocation9 + $0x1f8] sm:$0xff]  ;;  %v1604_v28 = vlaneseq }
 0x31e   : > { %v2168_v16 = vcombine.high %v1096_v10, %v1100_v11  ;;  %v1108_v19 = vld [vmem:[#allocation9 + $0x1f0] sm:$0xff]  ;;  %v2167_v22 = vcombine.low %v1096_v10, %v1100_v11  ;;  %v2178_v25 = vcombine.high %v1105_v20, %v1109_v21  ;;  %v2177_v27 = vcombine.low %v1105_v20, %v1109_v21 }
 0x31f   : > { %v1044_v38 = vmax.f32 %v1040_v3, %v1042_v31  ;;  %v2176_v24 = vcombine.high %v1104_v18, %v1108_v19  ;;  %v2175_v26 = vcombine.low %v1104_v18, %v1108_v19  ;;  %v2935_v29 = vshrl.u32 %v1604_v28, 7  ;;  %v2942_v31 = vld [vmem:[%s3053_s8] sm:$0xff] }
 0x321   : > { %v2921_v39 = vpack.c.bf16 %v1044_v38, %v1043_v5  ;;  %v1606_v3 = vsub.s32 0, %v2935_v29  ;;  %v1614_v30 = vsub.s32 2, %v2935_v29  ;;  %v1610_v33 = vsub.s32 1, %v2935_v29 }
 0x322   : > { %v1618_v35 = vsub.s32 3, %v2935_v29 }
 0x323   : > { %1463 = vmatmul.mubr.bf16.vlgmr.msra.gmra.mrb[16].mxu0 %v2921_v39  ;;  %1506 = vmatmul.mubr.bf16.vlgmr.msra.gmra.mrb[16].mxu1 %v2921_v39  ;;  %v1607_v37 = vrot.slane %v2942_v31, %v1606_v3  ;;  %v1615_v5 = vrot.slane %v2942_v31, %v1614_v30  ;;  %v1611_v38 = vrot.slane %v2942_v31, %v1610_v33 }
 0x324   : > { %1517 = vmatpush1.bf16.msra.mxu0 %v2119_v58  ;;  %1560 = vmatpush1.bf16.msra.mxu1 %v2121_v60  ;;  %v2146_v58 = vcombine.high %v1073_v56, %v1077_v57  ;;  %v1084_v60 = vld [vmem:[#allocation9 + $0x130] sm:$0xff]  ;;  %v1669_v45 = vrot.slane %v2949_v36, %v1610_v33  ;;  %v1677_v46 = vrot.slane %v2949_v36, %v1618_v35 }
 0x325   : > { %1518 = vmatprep.subr.bf16.mxu0 %v2128_v40  ;;  %1561 = vmatprep.subr.bf16.mxu1 %v2130_v41  ;;  %v2152_v63 = vcombine.high %v1080_v59, %v1084_v60  ;;  %v2151_v6 = vcombine.low %v1080_v59, %v1084_v60  ;;  %v1665_v40 = vrot.slane %v2949_v36, %v1606_v3 }
 0x326   : > { %1548 = vmatprep.mubr.bf16.mxu0 %v2564_v43  ;;  %1591 = vmatprep.mubr.bf16.mxu1 %v2564_v43  ;;  %v2154_v43 = vcombine.high %v1081_v32, %v1085_v61  ;;  %v1673_v41 = vrot.slane %v2949_v36, %v1614_v30  ;;  %v2565_v30 = vmov 1966171168  }
 0x327   : > { %v1839_v33 = vunpack.c.l.s4 %v2565_v30 }
 0x328   : > { %1519 = vmatpush1.bf16.msra.mxu0 %v2127_v47  ;;  %1562 = vmatpush1.bf16.msra.mxu1 %v2129_v48 }
 0x329   : > { %1520 = vmatprep.subr.bf16.mxu0 %v2136_v49  ;;  %1563 = vmatprep.subr.bf16.mxu1 %v2138_v50 }
 0x32c   : > { %1521 = vmatpush1.bf16.msra.mxu0 %v2135_v53  ;;  %1564 = vmatpush1.bf16.msra.mxu1 %v2137_v54 }
 0x32d   : > { %1522 = vmatprep.subr.bf16.mxu0 %v2144_v55  ;;  %1565 = vmatprep.subr.bf16.mxu1 %v2146_v58 }
 0x330   : > { %1523 = vmatpush1.bf16.msra.mxu0 %v2143_v62  ;;  %1566 = vmatpush1.bf16.msra.mxu1 %v2145_v34 }
 0x331   : > { %1524 = vmatprep.subr.bf16.mxu0 %v2152_v63  ;;  %1567 = vmatprep.subr.bf16.mxu1 %v2154_v43 }
 0x334   : > { %1525 = vmatpush1.bf16.msra.mxu0 %v2151_v6  ;;  %1568 = vmatpush1.bf16.msra.mxu1 %v2153_v7 }
 0x335   : > { %1526 = vmatprep.subr.bf16.mxu0 %v2160_v8  ;;  %1569 = vmatprep.subr.bf16.mxu1 %v2162_v9 }
 0x338   : > { %1527 = vmatpush1.bf16.msra.mxu0 %v2159_v14  ;;  %1570 = vmatpush1.bf16.msra.mxu1 %v2161_v15 }
 0x339   : > { %1528 = vmatprep.subr.bf16.mxu0 %v2168_v16  ;;  %1571 = vmatprep.subr.bf16.mxu1 %v2170_v17 }
 0x33c   : > { %1529 = vmatpush1.bf16.msra.mxu0 %v2167_v22  ;;  %1572 = vmatpush1.bf16.msra.mxu1 %v2169_v23 }
 0x33d   : > { %1530 = vmatprep.subr.bf16.mxu0 %v2176_v24  ;;  %1573 = vmatprep.subr.bf16.mxu1 %v2178_v25 }
 0x340   : > { %1531 = vmatpush1.bf16.msra.mxu0 %v2175_v26  ;;  %1574 = vmatpush1.bf16.msra.mxu1 %v2177_v27 }
 0x343   : > { %1549 = vmatmul.mubr.bf16.vlgmr.msra.gmra.mrb[20].mxu0 %v2921_v39  ;;  %1592 = vmatmul.mubr.bf16.vlgmr.msra.gmra.mrb[20].mxu1 %v2921_v39  ;;  %v1619_v39 = vrot.slane %v2942_v31, %v1618_v35 }
 0x3f6   : > { %v1464_v42 = vpop.f32.mrb[16].mxu0  ;;  %v1507_v44 = vpop.f32.mrb[16].mxu1 }
 0x3f7   : > { %v1644_v47 = vmul.f32 %v1607_v37, %v1464_v42  ;;  %v1646_v48 = vmul.f32 %v1615_v5, %v1507_v44  ;;  %v1466_v49 = vpop.f32.mrb[17].mxu0  ;;  %v1509_v50 = vpop.f32.mrb[17].mxu1  ;;  %v1840_v44 = vunpack.c.0.s8 %v1839_v33 }
 0x3f8   : > { %v1645_v51 = vmul.f32 %v1611_v38, %v1466_v49  ;;  %v1647_v52 = vmul.f32 %v1619_v39, %v1509_v50  ;;  %v1468_v56 = vpop.f32.mrb[18].mxu0  ;;  %v1511_v57 = vpop.f32.mrb[18].mxu1 }
 0x3f9   : > { %v1702_v53 = vadd.f32 %v1665_v40, %v1644_v47  ;;  %v1704_v54 = vadd.f32 %v1673_v41, %v1646_v48  ;;  %v1652_v55 = vmul.f32 %v1607_v37, %v1468_v56  ;;  %v1654_v58 = vmul.f32 %v1615_v5, %v1511_v57  ;;  %v1470_v59 = vpop.f32.mrb[19].mxu0  ;;  %v1513_v60 = vpop.f32.mrb[19].mxu1 }
 0x3fa   : > { %v1703_v32 = vadd.f32 %v1669_v45, %v1645_v51  ;;  %v1705_v61 = vadd.f32 %v1677_v46, %v1647_v52  ;;  %v1653_v62 = vmul.f32 %v1611_v38, %v1470_v59  ;;  %v1655_v34 = vmul.f32 %v1619_v39, %v1513_v60 }
 0x3fb   : > { %vm1718_vm4 = vcmp.ge.f32.partialorder %v1702_v53, 0.0  ;;  %v1734_v63 = vmul.f32 0.2, %v1702_v53  ;;  %vm1720_vm5 = vcmp.ge.f32.partialorder %v1704_v54, 0.0  ;;  %v1736_v43 = vmul.f32 0.2, %v1704_v54 }
 0x3fc   : > { %vm1719_vm6 = vcmp.ge.f32.partialorder %v1703_v32, 0.0  ;;  %v1735_v0 = vmul.f32 0.2, %v1703_v32  ;;  %vm1721_vm7 = vcmp.ge.f32.partialorder %v1705_v61, 0.0  ;;  %v1737_v1 = vmul.f32 0.2, %v1705_v61 }
 0x3fd   : > { %v1710_v2 = vadd.f32 %v1665_v40, %v1652_v55  ;;  %v1712_v4 = vadd.f32 %v1673_v41, %v1654_v58  ;;  %v1750_v6 = vsel %vm1718_vm4, %v1702_v53, %v1734_v63  ;;  %v1752_v7 = vsel %vm1720_vm5, %v1704_v54, %v1736_v43 }
 0x3fe   : > { %v1711_v8 = vadd.f32 %v1669_v45, %v1653_v62  ;;  %v1713_v9 = vadd.f32 %v1677_v46, %v1655_v34  ;;  %v1751_v14 = vsel %vm1719_vm6, %v1703_v32, %v1735_v0  ;;  %v1753_v15 = vsel %vm1721_vm7, %v1705_v61, %v1737_v1 }
 0x3ff   : > { %vm1726_vm8 = vcmp.ge.f32.partialorder %v1710_v2, 0.0  ;;  %v1742_v10 = vmul.f32 0.2, %v1710_v2  ;;  %vm1728_vm9 = vcmp.ge.f32.partialorder %v1712_v4, 0.0  ;;  %v1744_v11 = vmul.f32 0.2, %v1712_v4 }
 0x400   : > { %vm1727_vm10 = vcmp.ge.f32.partialorder %v1711_v8, 0.0  ;;  %v1743_v12 = vmul.f32 0.2, %v1711_v8  ;;  %vm1729_vm11 = vcmp.ge.f32.partialorder %v1713_v9, 0.0  ;;  %v1745_v13 = vmul.f32 0.2, %v1713_v9 }
 0x401   : > { %v1758_v16 = vsel %vm1726_vm8, %v1710_v2, %v1742_v10  ;;  %v1760_v17 = vsel %vm1728_vm9, %v1712_v4, %v1744_v11  ;;  %v2962_v56 = vsub.s32 %v1840_v44, %v2935_v29  ;;  %v1622_v54 = vsub.s32 4, %v2935_v29 }
 0x402   : > { %v1766_v18 = vmax.f32 %v1750_v6, %v1758_v16  ;;  %v1780_v19 = vmax.f32 %v1752_v7, %v1760_v17  ;;  %v1759_v20 = vsel %vm1727_vm10, %v1711_v8, %v1743_v12  ;;  %v1761_v21 = vsel %vm1729_vm11, %v1713_v9, %v1745_v13 }
 0x403   : > { %v1773_v22 = vmax.f32 %v1751_v14, %v1759_v20  ;;  %v1787_v23 = vmax.f32 %v1753_v15, %v1761_v21  ;;  %v1630_v55 = vsub.s32 6, %v2935_v29  ;;  %v1626_v58 = vsub.s32 5, %v2935_v29 }
 0x404   : > { %v1767_v24 = vrot.slane %v1766_v18, 4  ;;  %v1781_v25 = vrot.slane %v1780_v19, 4  ;;  %v1634_v59 = vsub.s32 7, %v2935_v29  ;;  %v1623_v61 = vrot.slane %v2942_v31, %v1622_v54 }
 0x405   : > { %v1774_v26 = vrot.slane %v1773_v22, 4  ;;  %v1788_v27 = vrot.slane %v1787_v23, 4  ;;  %v1631_v62 = vrot.slane %v2942_v31, %v1630_v55  ;;  %v1627_v43 = vrot.slane %v2942_v31, %v1626_v58 }
 0x406   : > { %v1768_v28 = vmax.f32 %v1766_v18, %v1767_v24  ;;  %v1782_v3 = vmax.f32 %v1780_v19, %v1781_v25  ;;  %v1635_v0 = vrot.slane %v2942_v31, %v1634_v59  ;;  %v1681_v1 = vrot.slane %v2949_v36, %v1622_v54 }
 0x407   : > { %v1775_v35 = vmax.f32 %v1773_v22, %v1774_v26  ;;  %v1789_v37 = vmax.f32 %v1787_v23, %v1788_v27  ;;  %v1689_v29 = vrot.slane %v2949_v36, %v1630_v55  ;;  %v1685_v7 = vrot.slane %v2949_v36, %v1626_v58 }
 0x408   : > { %v1769_v5 = vrot.slane %v1768_v28, 2  ;;  %v1783_v38 = vrot.slane %v1782_v3, 2  ;;  %v1693_v8 = vrot.slane %v2949_v36, %v1634_v59 }
 0x409   : > { %v1776_v39 = vrot.slane %v1775_v35, 2  ;;  %v1790_v40 = vrot.slane %v1789_v37, 2 }
 0x40a   : > { %v1770_v41 = vmax.f32 %v1768_v28, %v1769_v5  ;;  %v1784_v42 = vmax.f32 %v1782_v3, %v1783_v38 }
 0x40b   : > { %v1777_v45 = vmax.f32 %v1775_v35, %v1776_v39  ;;  %v1791_v46 = vmax.f32 %v1789_v37, %v1790_v40 }
 0x40c   : > { %v1771_v47 = vrot.slane %v1770_v41, 1  ;;  %v1785_v48 = vrot.slane %v1784_v42, 1 }
 0x40d   : > { %v1778_v49 = vrot.slane %v1777_v45, 1  ;;  %v1792_v50 = vrot.slane %v1791_v46, 1 }
 0x40e   : > { %v1772_v51 = vmax.f32 %v1770_v41, %v1771_v47  ;;  %v1786_v52 = vmax.f32 %v1784_v42, %v1785_v48 }
 0x40f   : > { %v1779_v57 = vmax.f32 %v1777_v45, %v1778_v49  ;;  %v1793_v53 = vmax.f32 %v1791_v46, %v1792_v50 }
 0x411   : > { %v1834_v60 = vcombine.low %v1772_v51, %v1779_v57  ;;  %v1835_v32 = vcombine.low %v1786_v52, %v1793_v53 }
 0x413   : > { %v2971_v34 = vrot.slane %v1834_v60, %v2962_v56  ;;  %v2974_v63 = vrot.slane %v1835_v32, %v2962_v56 }
 0x415   : > { %v1866_v2 = vcombine.low %v2971_v34, %v2974_v63 }
 0x416   : > { %v1550_v4 = vpop.f32.mrb[20].mxu0  ;;  %v1593_v6 = vpop.f32.mrb[20].mxu1 }
 0x417   : > { %v1648_v9 = vmul.f32 %v1623_v61, %v1550_v4  ;;  %v1650_v10 = vmul.f32 %v1631_v62, %v1593_v6  ;;  %v1552_v11 = vpop.f32.mrb[21].mxu0  ;;  %v1595_v12 = vpop.f32.mrb[21].mxu1 }
 0x418   : > { %v1649_v13 = vmul.f32 %v1627_v43, %v1552_v11  ;;  %v1651_v14 = vmul.f32 %v1635_v0, %v1595_v12  ;;  %v1554_v31 = vpop.f32.mrb[22].mxu0  ;;  %v1597_v15 = vpop.f32.mrb[22].mxu1 }
 0x419   : > { %v1706_v16 = vadd.f32 %v1681_v1, %v1648_v9  ;;  %v1708_v17 = vadd.f32 %v1689_v29, %v1650_v10  ;;  %v1656_v18 = vmul.f32 %v1623_v61, %v1554_v31  ;;  %v1658_v19 = vmul.f32 %v1631_v62, %v1597_v15  ;;  %v1556_v20 = vpop.f32.mrb[23].mxu0  ;;  %v1599_v21 = vpop.f32.mrb[23].mxu1 }
 0x41a   : > { %v1707_v22 = vadd.f32 %v1685_v7, %v1649_v13  ;;  %v1709_v23 = vadd.f32 %v1693_v8, %v1651_v14  ;;  %v1657_v24 = vmul.f32 %v1627_v43, %v1556_v20  ;;  %v1659_v25 = vmul.f32 %v1635_v0, %v1599_v21 }
 0x41b   : > { %vm1722_vm12 = vcmp.ge.f32.partialorder %v1706_v16, 0.0  ;;  %v1738_v36 = vmul.f32 0.2, %v1706_v16  ;;  %vm1724_vm13 = vcmp.ge.f32.partialorder %v1708_v17, 0.0  ;;  %v1740_v26 = vmul.f32 0.2, %v1708_v17 }
 0x41c   : > { %vm1723_vm14 = vcmp.ge.f32.partialorder %v1707_v22, 0.0  ;;  %v1739_v27 = vmul.f32 0.2, %v1707_v22  ;;  %vm1725_vm15 = vcmp.ge.f32.partialorder %v1709_v23, 0.0  ;;  %v1741_v28 = vmul.f32 0.2, %v1709_v23 }
 0x41d   : > { %v1714_v3 = vadd.f32 %v1681_v1, %v1656_v18  ;;  %v1716_v30 = vadd.f32 %v1689_v29, %v1658_v19  ;;  %v1754_v33 = vsel %vm1722_vm12, %v1706_v16, %v1738_v36  ;;  %v1756_v35 = vsel %vm1724_vm13, %v1708_v17, %v1740_v26 }
 0x41e   : > { %v1715_v37 = vadd.f32 %v1685_v7, %v1657_v24  ;;  %v1717_v5 = vadd.f32 %v1693_v8, %v1659_v25  ;;  %v1755_v42 = vsel %vm1723_vm14, %v1707_v22, %v1739_v27  ;;  %v1757_v44 = vsel %vm1725_vm15, %v1709_v23, %v1741_v28 }
 0x41f   : > { %vm1730_vm0 = vcmp.ge.f32.partialorder %v1714_v3, 0.0  ;;  %v1746_v38 = vmul.f32 0.2, %v1714_v3  ;;  %vm1732_vm1 = vcmp.ge.f32.partialorder %v1716_v30, 0.0  ;;  %v1748_v39 = vmul.f32 0.2, %v1716_v30 }
 0x420   : > { %vm1731_vm2 = vcmp.ge.f32.partialorder %v1715_v37, 0.0  ;;  %v1747_v40 = vmul.f32 0.2, %v1715_v37  ;;  %vm1733_vm3 = vcmp.ge.f32.partialorder %v1717_v5, 0.0  ;;  %v1749_v41 = vmul.f32 0.2, %v1717_v5 }
 0x421   : > { %v1762_v45 = vsel %vm1730_vm0, %v1714_v3, %v1746_v38  ;;  %v1764_v46 = vsel %vm1732_vm1, %v1716_v30, %v1748_v39  ;;  %v1874_v19 = vrot.slane %v1866_v2, %v2962_v56 }
 0x422   : > { %v1794_v47 = vmax.f32 %v1754_v33, %v1762_v45  ;;  %v1808_v48 = vmax.f32 %v1756_v35, %v1764_v46  ;;  %v1763_v49 = vsel %vm1731_vm2, %v1715_v37, %v1747_v40  ;;  %v1765_v50 = vsel %vm1733_vm3, %v1717_v5, %v1749_v41 }
 0x423   : > { %v1801_v51 = vmax.f32 %v1755_v42, %v1763_v49  ;;  %v1815_v52 = vmax.f32 %v1757_v44, %v1765_v50 }
 0x424   : > { %v1795_v57 = vrot.slane %v1794_v47, 4  ;;  %v1809_v53 = vrot.slane %v1808_v48, 4 }
 0x425   : > { %v1802_v54 = vrot.slane %v1801_v51, 4  ;;  %v1816_v55 = vrot.slane %v1815_v52, 4 }
 0x426   : > { %v1796_v58 = vmax.f32 %v1794_v47, %v1795_v57  ;;  %v1810_v59 = vmax.f32 %v1808_v48, %v1809_v53 }
 0x427   : > { %v1803_v60 = vmax.f32 %v1801_v51, %v1802_v54  ;;  %v1817_v32 = vmax.f32 %v1815_v52, %v1816_v55 }
 0x428   : > { %v1797_v61 = vrot.slane %v1796_v58, 2  ;;  %v1811_v62 = vrot.slane %v1810_v59, 2 }
 0x429   : > { %v1804_v43 = vrot.slane %v1803_v60, 2  ;;  %v1818_v0 = vrot.slane %v1817_v32, 2 }
 0x42a   : > { %v1798_v1 = vmax.f32 %v1796_v58, %v1797_v61  ;;  %v1812_v29 = vmax.f32 %v1810_v59, %v1811_v62 }
 0x42b   : > { %v1805_v4 = vmax.f32 %v1803_v60, %v1804_v43  ;;  %v1819_v6 = vmax.f32 %v1817_v32, %v1818_v0 }
 0x42c   : > { %v1799_v7 = vrot.slane %v1798_v1, 1  ;;  %v1813_v8 = vrot.slane %v1812_v29, 1 }
 0x42d   : > { %v1806_v9 = vrot.slane %v1805_v4, 1  ;;  %v1820_v10 = vrot.slane %v1819_v6, 1 }
 0x42e   : > { %v1800_v11 = vmax.f32 %v1798_v1, %v1799_v7  ;;  %v1814_v12 = vmax.f32 %v1812_v29, %v1813_v8 }
 0x42f   : > { %v1807_v13 = vmax.f32 %v1805_v4, %v1806_v9  ;;  %v1821_v14 = vmax.f32 %v1819_v6, %v1820_v10 }
 0x431   : > { %v1836_v31 = vcombine.low %v1800_v11, %v1807_v13  ;;  %v1837_v15 = vcombine.low %v1814_v12, %v1821_v14 }
 0x433   : > { %v1858_v16 = vrot.slane %v1836_v31, %v2962_v56  ;;  %v1865_v17 = vrot.slane %v1837_v15, %v2962_v56 }
 0x435   : > { %v1867_v18 = vcombine.low %v1858_v16, %v1865_v17 }
 0x437   : > { %v1881_v20 = vrot.slane %v1867_v18, %v2962_v56 }
 0x439   : > { %v1882_v21 = vcombine.low %v1874_v19, %v1881_v20 }
 0x43b   : > { %1884 = vst [vmem:[%s423_s12] sm:$0xff] %v1882_v21 }
 0x43c   : > { %2479 = shalt.err (!%p2476_p6)
}
 0x43d   : > { %s2480_s21 = scalar_lea.hbm %s2998_s15, 128  ;;  %s2484_s29 = scalar_lea.hbm %s3055_s10, 256 }
 0x43e   : > { %p2481_p7 = scmp.ne.s32.totalorder %s2998_s15, %s2480_s21  ;;  %p2485_p0 = scmp.lt.u32.totalorder %s2998_s15, %s3055_s10 }
 0x43f   : > { %p2486_p2 = scmp.lt.u32.totalorder %s2484_s29, %s2480_s21  ;;  %p2488_p1 = scmp.lt.u32.totalorder %s2480_s21, %s2998_s15 }
 0x440   : > { %p2482_p9 = pnand %p2481_p7, %p3081_p4 }
 0x441   : > { %p2487_p13 = por %p2486_p2, %p2485_p0 }
 0x442   : > { %p2483_p12 = pneg %p2482_p9 }
 0x443   : > { %p2489_p8 = por %p2488_p1, %p2487_p13 }
 0x445   : > { %p2490_p10 = pnand %p2489_p8, %p2483_p12 }
 0x447   : > { %2493 = shalt.err (!%p2490_p10)
}
 0x448   : > { %2265 = dma.vmem_to_hbm [thread:$0]  (%p3081_p4), %s3000_s19, 128, %s2998_s15, %s1951_s16  }
 0x449 PF: > { %s3082_s28 = sld [smem:[#allocation16_spill]]  ;;  %s3083_s26 = sld [smem:[#allocation20_spill]] }
 0x44a   : > { %p2292_p11 = scmp.ge.s32.totalorder %s2556_s18, 2 }
 0x44f   : > { %s1977_s12 = sand.u32 1, %s3082_s28   ;;  %p3084_p3 = scmp.ne.s32.totalorder %s3083_s26, 0 }
 0x450   : > { %s1978_s17 = scalar_lea.sflag [#allocation5], %s1977_s12 }
 0x451   : > { %p2281_p5 = pnand %p2292_p11, %p3084_p3 }
 0x453   : > { %2531 = dma.done.wait (!%p2281_p5), %s1978_s17, 128  }
 0x454   : > { %2533 = vsyncadd (!%p2281_p5), %s1978_s17, 4294967168  ;;  %s26_s18 = sadd.s32 1, %s2556_s18   ;;  %s3085_s30 = sld [smem:[#allocation17_spill]] }
 0x455   : > { %p23_p6 = scmp.ge.s32.totalorder %s26_s18, 4   ;;  %s3086_s15 = sld [smem:[#allocation21_spill]] }
 0x456   : > { %s3087_s16 = sld [smem:[#allocation18_spill]]  ;;  %s3088_s17 = sld [smem:[#allocation19_spill]] }
 0x457   : > { %s3089_s13 = smov %s2540_s14  ;;  %25 = sbr.rel (!%p23_p6) target bundleno = 9 (0x9), region = 135 }
 0x45a   : > { %s3090_s14 = smov %s3085_s30 }
 0x45e   :  { %1983 = vsyncpa [#allocation4], 1 }
 0x45f   :  { %1985 = vsyncpa [#allocation4 + $0x1], 1 }
 0x460   :  { %1986 = vsyncpa [#allocation7], 1 }
 0x461   :  { %1987 = vsyncpa [#allocation10], 1 }
 0x462   :  { %1988 = vsyncpa [#allocation5], 1 }
 0x463   :  { %1990 = vsyncpa [#allocation5 + $0x1], 1 }

</bundles_post_ra>
